<compile_context>
chip_gen: v7x
topology: tpu7x:2x2x1
jax: 0.10.0
libtpu: 0.0.40
codegen_flags: <defaults>
</compile_context>

<pallas_src>
import functools

import jax
import jax.numpy as jnp
from jax.experimental import pallas as pl
from jax.experimental.pallas import tpu as pltpu


def _spatial_attention_kernel(x_ref, w_ref, o_ref, pad_ref, *, C, H, W, K):
    """One batch element per grid step.

    x_ref  : (1, C, H, W)        VMEM  input features
    w_ref  : (2*K*K,)            SMEM  conv weights, flat (chan, ky, kx);
                                       chan 0 -> avg map, chan 1 -> max map
    o_ref  : (1, 1, H, W)        VMEM  sigmoid(conv(cat(avg, max)))
    pad_ref: (2, H+2P, W+2P)     VMEM  zero-padded avg/max maps (scratch)
    """
    P = K // 2
    Hp = H + 2 * P
    Wp = W + 2 * P
    inv_c = 1.0 / C

    # ---- channel-wise mean & max: stream one channel tile at a time (VPU) ----
    x0 = x_ref[0, 0].astype(jnp.float32)
    s = x0
    m = x0
    for c in range(1, C):
        xc = x_ref[0, c].astype(jnp.float32)
        s = s + xc
        m = jnp.maximum(m, xc)
    avg = s * inv_c

    # ---- zero only the P-pixel border of the scratch (interior is fully ----
    # overwritten each step).  Done every step so correctness does not depend
    # on which TensorCore saw program_id == 0.
    pad_ref[:, 0:P, :] = jnp.zeros((2, P, Wp), jnp.float32)
    pad_ref[:, P + H:Hp, :] = jnp.zeros((2, P, Wp), jnp.float32)
    pad_ref[:, :, 0:P] = jnp.zeros((2, Hp, P), jnp.float32)
    pad_ref[:, :, P + W:Wp] = jnp.zeros((2, Hp, P), jnp.float32)

    # interior: padded avg / max maps
    pad_ref[0, P:P + H, P:P + W] = avg
    pad_ref[1, P:P + H, P:P + W] = m

    # ---- K x K conv over the 2-channel map: 2*K*K scalar FMAs on (H, W) ----
    # windows.  Weights come from SMEM (scalar ALU); windows are plain 2-D
    # views of the scratch (no reshapes).
    acc = jnp.zeros((H, W), jnp.float32)
    for c in range(2):
        for ky in range(K):
            for kx in range(K):
                w = w_ref[c * K * K + ky * K + kx]
                acc = acc + w * pad_ref[c, ky:ky + H, kx:kx + W]

    # sigmoid (exp on the EUP)
    y = 1.0 / (1.0 + jnp.exp(-acc))
    o_ref[0, 0] = y.astype(o_ref.dtype)


def spatial_attention_pallas(x_nchw, weight, *, kernel_size=7):
    """SpatialAttention forward.

    x_nchw : (N, C, H, W) float32
    weight : (1, 2, K, K) Conv2d(2, 1, K, padding=K//2, bias=False) weight
    returns: (N, 1, H, W)
    """
    assert kernel_size in (3, 7), "kernel size must be 3 or 7"
    N, C, H, W = x_nchw.shape
    K = kernel_size
    P = K // 2
    assert weight.shape == (1, 2, K, K), weight.shape

    w_flat = weight.reshape(2 * K * K).astype(jnp.float32)

    kernel = functools.partial(_spatial_attention_kernel, C=C, H=H, W=W, K=K)

    # Advisory cost hint for XLA's scheduler.
    flops_per_img = H * W * (2 * C + 4 * K * K)       # reduction + conv FMAs
    cost = pl.CostEstimate(
        flops=N * flops_per_img,
        transcendentals=N * H * W,                    # exp in sigmoid
        bytes_accessed=4 * (x_nchw.size + N * H * W + w_flat.size))

    out = pl.pallas_call(
        kernel,
        out_shape=jax.ShapeDtypeStruct((N, 1, H, W), x_nchw.dtype),
        grid_spec=pltpu.PrefetchScalarGridSpec(
            num_scalar_prefetch=0,
            grid=(N,),
            in_specs=[
                pl.BlockSpec((1, C, H, W), lambda n: (n, 0, 0, 0)),
                pl.BlockSpec(memory_space=pltpu.MemorySpace.SMEM),  # weights
            ],
            out_specs=pl.BlockSpec((1, 1, H, W), lambda n: (n, 0, 0, 0)),
            scratch_shapes=[
                pltpu.VMEM((2, H + 2 * P, W + 2 * P), jnp.float32),
            ],
        ),
        compiler_params=pltpu.CompilerParams(
            dimension_semantics=("parallel",),
            vmem_limit_bytes=32 * 1024 * 1024),
        cost_estimate=cost,
    )(x_nchw, w_flat)

    return out


# ---------------- pure-JAX reference (for correctness check) ----------------
def spatial_attention_ref(x, weight, *, kernel_size=7):
    avg = jnp.mean(x, axis=1, keepdims=True)
    mx = jnp.max(x, axis=1, keepdims=True)
    cat = jnp.concatenate([avg, mx], axis=1)
    p = kernel_size // 2
    y = jax.lax.conv_general_dilated(
        cat, weight, window_strides=(1, 1), padding=[(p, p), (p, p)],
        dimension_numbers=('NCHW', 'OIHW', 'NCHW'))
    return jax.nn.sigmoid(y)


if __name__ == "__main__":
    N, C, H, W = 2, 4, 16, 16
    K = 7

    key = jax.random.PRNGKey(0)
    kx, kw = jax.random.split(key)

    x = jax.random.normal(kx, (N, C, H, W), jnp.float32)
    weight = 0.1 * jax.random.normal(kw, (1, 2, K, K), jnp.float32)

    out = spatial_attention_pallas(x, weight, kernel_size=K)
    out = jax.block_until_ready(out)

    ref = spatial_attention_ref(x, weight, kernel_size=K)
    assert out.shape == (N, 1, H, W), out.shape
    assert jnp.allclose(out, ref, atol=1e-5, rtol=1e-5), (
        float(jnp.max(jnp.abs(out - ref))))

    print("KERNEL_OK")
</pallas_src>

<mosaic_0001>
module attributes {stable_mosaic.version = 11 : i64} {
  func.func @_spatial_attention_kernel(%arg0: i32, %arg1: memref<1x4x16x16xf32, #tpu.memory_space<vmem>>, %arg2: memref<98xf32, #tpu.memory_space<smem>>, %arg3: memref<1x1x16x16xf32, #tpu.memory_space<vmem>>, %arg4: memref<2x22x22xf32, #tpu.memory_space<vmem>>) attributes {dimension_semantics = [#tpu.dimension_semantics<parallel>], iteration_bounds = array<i64: 2>, scalar_prefetch = 0 : i64, scratch_operands = 1 : i64, tpu.core_type = #tpu.core_type<tc>, window_params = [{transform_indices = @transform_0, window_bounds = array<i64: 1, 4, 16, 16>}, {transform_indices = @transform_1, window_bounds = array<i64: 98>}, {transform_indices = @transform_2, window_bounds = array<i64: 1, 1, 16, 16>}]} {
    %c0 = arith.constant 0 : index
    %c0_0 = arith.constant 0 : index
    %c0_1 = arith.constant 0 : index
    %c0_2 = arith.constant 0 : index
    %0 = vector.load %arg1[%c0, %c0_0, %c0_1, %c0_2] : memref<1x4x16x16xf32, #tpu.memory_space<vmem>>, vector<1x1x16x16xf32>
    %1 = vector.shape_cast %0 : vector<1x1x16x16xf32> to vector<16x16xf32>
    %c0_3 = arith.constant 0 : index
    %c1 = arith.constant 1 : index
    %c0_4 = arith.constant 0 : index
    %c0_5 = arith.constant 0 : index
    %2 = vector.load %arg1[%c0_3, %c1, %c0_4, %c0_5] : memref<1x4x16x16xf32, #tpu.memory_space<vmem>>, vector<1x1x16x16xf32>
    %3 = vector.shape_cast %2 : vector<1x1x16x16xf32> to vector<16x16xf32>
    %4 = arith.addf %1, %3 : vector<16x16xf32>
    %5 = arith.maximumf %1, %3 : vector<16x16xf32>
    %c0_6 = arith.constant 0 : index
    %c2 = arith.constant 2 : index
    %c0_7 = arith.constant 0 : index
    %c0_8 = arith.constant 0 : index
    %6 = vector.load %arg1[%c0_6, %c2, %c0_7, %c0_8] : memref<1x4x16x16xf32, #tpu.memory_space<vmem>>, vector<1x1x16x16xf32>
    %7 = vector.shape_cast %6 : vector<1x1x16x16xf32> to vector<16x16xf32>
    %8 = arith.addf %4, %7 : vector<16x16xf32>
    %9 = arith.maximumf %5, %7 : vector<16x16xf32>
    %c0_9 = arith.constant 0 : index
    %c3 = arith.constant 3 : index
    %c0_10 = arith.constant 0 : index
    %c0_11 = arith.constant 0 : index
    %10 = vector.load %arg1[%c0_9, %c3, %c0_10, %c0_11] : memref<1x4x16x16xf32, #tpu.memory_space<vmem>>, vector<1x1x16x16xf32>
    %11 = vector.shape_cast %10 : vector<1x1x16x16xf32> to vector<16x16xf32>
    %12 = arith.addf %8, %11 : vector<16x16xf32>
    %13 = arith.maximumf %9, %11 : vector<16x16xf32>
    %cst = arith.constant 2.500000e-01 : f32
    %14 = vector.broadcast %cst : f32 to vector<16x16xf32>
    %15 = arith.mulf %12, %14 : vector<16x16xf32>
    %cst_12 = arith.constant 0.000000e+00 : f32
    %16 = vector.broadcast %cst_12 : f32 to vector<2x3x22xf32>
    %c0_13 = arith.constant 0 : index
    %c0_14 = arith.constant 0 : index
    %c0_15 = arith.constant 0 : index
    %17 = vector.load %arg4[%c0_13, %c0_14, %c0_15] : memref<2x22x22xf32, #tpu.memory_space<vmem>>, vector<2x3x22xf32>
    tpu.vector_store %arg4[%c0_13, %c0_14, %c0_15], %16 {strides = array<i32>} : memref<2x22x22xf32, #tpu.memory_space<vmem>>, vector<2x3x22xf32>,
    %cst_16 = arith.constant 0.000000e+00 : f32
    %18 = vector.broadcast %cst_16 : f32 to vector<2x3x22xf32>
    %c0_17 = arith.constant 0 : index
    %c19 = arith.constant 19 : index
    %c0_18 = arith.constant 0 : index
    %19 = vector.load %arg4[%c0_17, %c19, %c0_18] : memref<2x22x22xf32, #tpu.memory_space<vmem>>, vector<2x3x22xf32>
    tpu.vector_store %arg4[%c0_17, %c19, %c0_18], %18 {strides = array<i32>} : memref<2x22x22xf32, #tpu.memory_space<vmem>>, vector<2x3x22xf32>,
    %cst_19 = arith.constant 0.000000e+00 : f32
    %20 = vector.broadcast %cst_19 : f32 to vector<2x22x3xf32>
    %c0_20 = arith.constant 0 : index
    %c0_21 = arith.constant 0 : index
    %c0_22 = arith.constant 0 : index
    %21 = vector.load %arg4[%c0_20, %c0_21, %c0_22] : memref<2x22x22xf32, #tpu.memory_space<vmem>>, vector<2x22x3xf32>
    tpu.vector_store %arg4[%c0_20, %c0_21, %c0_22], %20 {strides = array<i32>} : memref<2x22x22xf32, #tpu.memory_space<vmem>>, vector<2x22x3xf32>,
    %cst_23 = arith.constant 0.000000e+00 : f32
    %22 = vector.broadcast %cst_23 : f32 to vector<2x22x3xf32>
    %c0_24 = arith.constant 0 : index
    %c0_25 = arith.constant 0 : index
    %c19_26 = arith.constant 19 : index
    %23 = vector.load %arg4[%c0_24, %c0_25, %c19_26] : memref<2x22x22xf32, #tpu.memory_space<vmem>>, vector<2x22x3xf32>
    tpu.vector_store %arg4[%c0_24, %c0_25, %c19_26], %22 {strides = array<i32>} : memref<2x22x22xf32, #tpu.memory_space<vmem>>, vector<2x22x3xf32>,
    %c0_27 = arith.constant 0 : index
    %c3_28 = arith.constant 3 : index
    %c3_29 = arith.constant 3 : index
    %24 = vector.load %arg4[%c0_27, %c3_28, %c3_29] : memref<2x22x22xf32, #tpu.memory_space<vmem>>, vector<1x16x16xf32>
    %25 = vector.shape_cast %24 : vector<1x16x16xf32> to vector<16x16xf32>
    %26 = vector.shape_cast %15 : vector<16x16xf32> to vector<1x16x16xf32>
    tpu.vector_store %arg4[%c0_27, %c3_28, %c3_29], %26 {strides = array<i32>} : memref<2x22x22xf32, #tpu.memory_space<vmem>>, vector<1x16x16xf32>,
    %c1_30 = arith.constant 1 : index
    %c3_31 = arith.constant 3 : index
    %c3_32 = arith.constant 3 : index
    %27 = vector.load %arg4[%c1_30, %c3_31, %c3_32] : memref<2x22x22xf32, #tpu.memory_space<vmem>>, vector<1x16x16xf32>
    %28 = vector.shape_cast %27 : vector<1x16x16xf32> to vector<16x16xf32>
    %29 = vector.shape_cast %13 : vector<16x16xf32> to vector<1x16x16xf32>
    tpu.vector_store %arg4[%c1_30, %c3_31, %c3_32], %29 {strides = array<i32>} : memref<2x22x22xf32, #tpu.memory_space<vmem>>, vector<1x16x16xf32>,
    %cst_33 = arith.constant 0.000000e+00 : f32
    %30 = vector.broadcast %cst_33 : f32 to vector<16x16xf32>
    %c0_34 = arith.constant 0 : index
    %31 = memref.load %arg2[%c0_34] : memref<98xf32, #tpu.memory_space<smem>>
    %c0_35 = arith.constant 0 : index
    %c0_36 = arith.constant 0 : index
    %c0_37 = arith.constant 0 : index
    %32 = vector.load %arg4[%c0_35, %c0_36, %c0_37] : memref<2x22x22xf32, #tpu.memory_space<vmem>>, vector<1x16x16xf32>
    %33 = vector.shape_cast %32 : vector<1x16x16xf32> to vector<16x16xf32>
    %34 = vector.broadcast %31 : f32 to vector<16x16xf32>
    %35 = arith.mulf %34, %33 : vector<16x16xf32>
    %36 = arith.addf %30, %35 : vector<16x16xf32>
    %c1_38 = arith.constant 1 : index
    %37 = memref.load %arg2[%c1_38] : memref<98xf32, #tpu.memory_space<smem>>
    %c0_39 = arith.constant 0 : index
    %c0_40 = arith.constant 0 : index
    %c1_41 = arith.constant 1 : index
    %38 = vector.load %arg4[%c0_39, %c0_40, %c1_41] : memref<2x22x22xf32, #tpu.memory_space<vmem>>, vector<1x16x16xf32>
    %39 = vector.shape_cast %38 : vector<1x16x16xf32> to vector<16x16xf32>
    %40 = vector.broadcast %37 : f32 to vector<16x16xf32>
    %41 = arith.mulf %40, %39 : vector<16x16xf32>
    %42 = arith.addf %36, %41 : vector<16x16xf32>
    %c2_42 = arith.constant 2 : index
    %43 = memref.load %arg2[%c2_42] : memref<98xf32, #tpu.memory_space<smem>>
    %c0_43 = arith.constant 0 : index
    %c0_44 = arith.constant 0 : index
    %c2_45 = arith.constant 2 : index
    %44 = vector.load %arg4[%c0_43, %c0_44, %c2_45] : memref<2x22x22xf32, #tpu.memory_space<vmem>>, vector<1x16x16xf32>
    %45 = vector.shape_cast %44 : vector<1x16x16xf32> to vector<16x16xf32>
    %46 = vector.broadcast %43 : f32 to vector<16x16xf32>
    %47 = arith.mulf %46, %45 : vector<16x16xf32>
    %48 = arith.addf %42, %47 : vector<16x16xf32>
    %c3_46 = arith.constant 3 : index
    %49 = memref.load %arg2[%c3_46] : memref<98xf32, #tpu.memory_space<smem>>
    %c0_47 = arith.constant 0 : index
    %c0_48 = arith.constant 0 : index
    %c3_49 = arith.constant 3 : index
    %50 = vector.load %arg4[%c0_47, %c0_48, %c3_49] : memref<2x22x22xf32, #tpu.memory_space<vmem>>, vector<1x16x16xf32>
    %51 = vector.shape_cast %50 : vector<1x16x16xf32> to vector<16x16xf32>
    %52 = vector.broadcast %49 : f32 to vector<16x16xf32>
    %53 = arith.mulf %52, %51 : vector<16x16xf32>
    %54 = arith.addf %48, %53 : vector<16x16xf32>
    %c4 = arith.constant 4 : index
    %55 = memref.load %arg2[%c4] : memref<98xf32, #tpu.memory_space<smem>>
    %c0_50 = arith.constant 0 : index
    %c0_51 = arith.constant 0 : index
    %c4_52 = arith.constant 4 : index
    %56 = vector.load %arg4[%c0_50, %c0_51, %c4_52] : memref<2x22x22xf32, #tpu.memory_space<vmem>>, vector<1x16x16xf32>
    %57 = vector.shape_cast %56 : vector<1x16x16xf32> to vector<16x16xf32>
    %58 = vector.broadcast %55 : f32 to vector<16x16xf32>
    %59 = arith.mulf %58, %57 : vector<16x16xf32>
    %60 = arith.addf %54, %59 : vector<16x16xf32>
    %c5 = arith.constant 5 : index
    %61 = memref.load %arg2[%c5] : memref<98xf32, #tpu.memory_space<smem>>
    %c0_53 = arith.constant 0 : index
    %c0_54 = arith.constant 0 : index
    %c5_55 = arith.constant 5 : index
    %62 = vector.load %arg4[%c0_53, %c0_54, %c5_55] : memref<2x22x22xf32, #tpu.memory_space<vmem>>, vector<1x16x16xf32>
    %63 = vector.shape_cast %62 : vector<1x16x16xf32> to vector<16x16xf32>
    %64 = vector.broadcast %61 : f32 to vector<16x16xf32>
    %65 = arith.mulf %64, %63 : vector<16x16xf32>
    %66 = arith.addf %60, %65 : vector<16x16xf32>
    %c6 = arith.constant 6 : index
    %67 = memref.load %arg2[%c6] : memref<98xf32, #tpu.memory_space<smem>>
    %c0_56 = arith.constant 0 : index
    %c0_57 = arith.constant 0 : index
    %c6_58 = arith.constant 6 : index
    %68 = vector.load %arg4[%c0_56, %c0_57, %c6_58] : memref<2x22x22xf32, #tpu.memory_space<vmem>>, vector<1x16x16xf32>
    %69 = vector.shape_cast %68 : vector<1x16x16xf32> to vector<16x16xf32>
    %70 = vector.broadcast %67 : f32 to vector<16x16xf32>
    %71 = arith.mulf %70, %69 : vector<16x16xf32>
    %72 = arith.addf %66, %71 : vector<16x16xf32>
    %c7 = arith.constant 7 : index
    %73 = memref.load %arg2[%c7] : memref<98xf32, #tpu.memory_space<smem>>
    %c0_59 = arith.constant 0 : index
    %c1_60 = arith.constant 1 : index
    %c0_61 = arith.constant 0 : index
    %74 = vector.load %arg4[%c0_59, %c1_60, %c0_61] : memref<2x22x22xf32, #tpu.memory_space<vmem>>, vector<1x16x16xf32>
    %75 = vector.shape_cast %74 : vector<1x16x16xf32> to vector<16x16xf32>
    %76 = vector.broadcast %73 : f32 to vector<16x16xf32>
    %77 = arith.mulf %76, %75 : vector<16x16xf32>
    %78 = arith.addf %72, %77 : vector<16x16xf32>
    %c8 = arith.constant 8 : index
    %79 = memref.load %arg2[%c8] : memref<98xf32, #tpu.memory_space<smem>>
    %c0_62 = arith.constant 0 : index
    %c1_63 = arith.constant 1 : index
    %c1_64 = arith.constant 1 : index
    %80 = vector.load %arg4[%c0_62, %c1_63, %c1_64] : memref<2x22x22xf32, #tpu.memory_space<vmem>>, vector<1x16x16xf32>
    %81 = vector.shape_cast %80 : vector<1x16x16xf32> to vector<16x16xf32>
    %82 = vector.broadcast %79 : f32 to vector<16x16xf32>
    %83 = arith.mulf %82, %81 : vector<16x16xf32>
    %84 = arith.addf %78, %83 : vector<16x16xf32>
    %c9 = arith.constant 9 : index
    %85 = memref.load %arg2[%c9] : memref<98xf32, #tpu.memory_space<smem>>
    %c0_65 = arith.constant 0 : index
    %c1_66 = arith.constant 1 : index
    %c2_67 = arith.constant 2 : index
    %86 = vector.load %arg4[%c0_65, %c1_66, %c2_67] : memref<2x22x22xf32, #tpu.memory_space<vmem>>, vector<1x16x16xf32>
    %87 = vector.shape_cast %86 : vector<1x16x16xf32> to vector<16x16xf32>
    %88 = vector.broadcast %85 : f32 to vector<16x16xf32>
    %89 = arith.mulf %88, %87 : vector<16x16xf32>
    %90 = arith.addf %84, %89 : vector<16x16xf32>
    %c10 = arith.constant 10 : index
    %91 = memref.load %arg2[%c10] : memref<98xf32, #tpu.memory_space<smem>>
    %c0_68 = arith.constant 0 : index
    %c1_69 = arith.constant 1 : index
    %c3_70 = arith.constant 3 : index
    %92 = vector.load %arg4[%c0_68, %c1_69, %c3_70] : memref<2x22x22xf32, #tpu.memory_space<vmem>>, vector<1x16x16xf32>
    %93 = vector.shape_cast %92 : vector<1x16x16xf32> to vector<16x16xf32>
    %94 = vector.broadcast %91 : f32 to vector<16x16xf32>
    %95 = arith.mulf %94, %93 : vector<16x16xf32>
    %96 = arith.addf %90, %95 : vector<16x16xf32>
    %c11 = arith.constant 11 : index
    %97 = memref.load %arg2[%c11] : memref<98xf32, #tpu.memory_space<smem>>
    %c0_71 = arith.constant 0 : index
    %c1_72 = arith.constant 1 : index
    %c4_73 = arith.constant 4 : index
    %98 = vector.load %arg4[%c0_71, %c1_72, %c4_73] : memref<2x22x22xf32, #tpu.memory_space<vmem>>, vector<1x16x16xf32>
    %99 = vector.shape_cast %98 : vector<1x16x16xf32> to vector<16x16xf32>
    %100 = vector.broadcast %97 : f32 to vector<16x16xf32>
    %101 = arith.mulf %100, %99 : vector<16x16xf32>
    %102 = arith.addf %96, %101 : vector<16x16xf32>
    %c12 = arith.constant 12 : index
    %103 = memref.load %arg2[%c12] : memref<98xf32, #tpu.memory_space<smem>>
    %c0_74 = arith.constant 0 : index
    %c1_75 = arith.constant 1 : index
    %c5_76 = arith.constant 5 : index
    %104 = vector.load %arg4[%c0_74, %c1_75, %c5_76] : memref<2x22x22xf32, #tpu.memory_space<vmem>>, vector<1x16x16xf32>
    %105 = vector.shape_cast %104 : vector<1x16x16xf32> to vector<16x16xf32>
    %106 = vector.broadcast %103 : f32 to vector<16x16xf32>
    %107 = arith.mulf %106, %105 : vector<16x16xf32>
    %108 = arith.addf %102, %107 : vector<16x16xf32>
    %c13 = arith.constant 13 : index
    %109 = memref.load %arg2[%c13] : memref<98xf32, #tpu.memory_space<smem>>
    %c0_77 = arith.constant 0 : index
    %c1_78 = arith.constant 1 : index
    %c6_79 = arith.constant 6 : index
    %110 = vector.load %arg4[%c0_77, %c1_78, %c6_79] : memref<2x22x22xf32, #tpu.memory_space<vmem>>, vector<1x16x16xf32>
    %111 = vector.shape_cast %110 : vector<1x16x16xf32> to vector<16x16xf32>
    %112 = vector.broadcast %109 : f32 to vector<16x16xf32>
    %113 = arith.mulf %112, %111 : vector<16x16xf32>
    %114 = arith.addf %108, %113 : vector<16x16xf32>
    %c14 = arith.constant 14 : index
    %115 = memref.load %arg2[%c14] : memref<98xf32, #tpu.memory_space<smem>>
    %c0_80 = arith.constant 0 : index
    %c2_81 = arith.constant 2 : index
    %c0_82 = arith.constant 0 : index
    %116 = vector.load %arg4[%c0_80, %c2_81, %c0_82] : memref<2x22x22xf32, #tpu.memory_space<vmem>>, vector<1x16x16xf32>
    %117 = vector.shape_cast %116 : vector<1x16x16xf32> to vector<16x16xf32>
    %118 = vector.broadcast %115 : f32 to vector<16x16xf32>
    %119 = arith.mulf %118, %117 : vector<16x16xf32>
    %120 = arith.addf %114, %119 : vector<16x16xf32>
    %c15 = arith.constant 15 : index
    %121 = memref.load %arg2[%c15] : memref<98xf32, #tpu.memory_space<smem>>
    %c0_83 = arith.constant 0 : index
    %c2_84 = arith.constant 2 : index
    %c1_85 = arith.constant 1 : index
    %122 = vector.load %arg4[%c0_83, %c2_84, %c1_85] : memref<2x22x22xf32, #tpu.memory_space<vmem>>, vector<1x16x16xf32>
    %123 = vector.shape_cast %122 : vector<1x16x16xf32> to vector<16x16xf32>
    %124 = vector.broadcast %121 : f32 to vector<16x16xf32>
    %125 = arith.mulf %124, %123 : vector<16x16xf32>
    %126 = arith.addf %120, %125 : vector<16x16xf32>
    %c16 = arith.constant 16 : index
    %127 = memref.load %arg2[%c16] : memref<98xf32, #tpu.memory_space<smem>>
    %c0_86 = arith.constant 0 : index
    %c2_87 = arith.constant 2 : index
    %c2_88 = arith.constant 2 : index
    %128 = vector.load %arg4[%c0_86, %c2_87, %c2_88] : memref<2x22x22xf32, #tpu.memory_space<vmem>>, vector<1x16x16xf32>
    %129 = vector.shape_cast %128 : vector<1x16x16xf32> to vector<16x16xf32>
    %130 = vector.broadcast %127 : f32 to vector<16x16xf32>
    %131 = arith.mulf %130, %129 : vector<16x16xf32>
    %132 = arith.addf %126, %131 : vector<16x16xf32>
    %c17 = arith.constant 17 : index
    %133 = memref.load %arg2[%c17] : memref<98xf32, #tpu.memory_space<smem>>
    %c0_89 = arith.constant 0 : index
    %c2_90 = arith.constant 2 : index
    %c3_91 = arith.constant 3 : index
    %134 = vector.load %arg4[%c0_89, %c2_90, %c3_91] : memref<2x22x22xf32, #tpu.memory_space<vmem>>, vector<1x16x16xf32>
    %135 = vector.shape_cast %134 : vector<1x16x16xf32> to vector<16x16xf32>
    %136 = vector.broadcast %133 : f32 to vector<16x16xf32>
    %137 = arith.mulf %136, %135 : vector<16x16xf32>
    %138 = arith.addf %132, %137 : vector<16x16xf32>
    %c18 = arith.constant 18 : index
    %139 = memref.load %arg2[%c18] : memref<98xf32, #tpu.memory_space<smem>>
    %c0_92 = arith.constant 0 : index
    %c2_93 = arith.constant 2 : index
    %c4_94 = arith.constant 4 : index
    %140 = vector.load %arg4[%c0_92, %c2_93, %c4_94] : memref<2x22x22xf32, #tpu.memory_space<vmem>>, vector<1x16x16xf32>
    %141 = vector.shape_cast %140 : vector<1x16x16xf32> to vector<16x16xf32>
    %142 = vector.broadcast %139 : f32 to vector<16x16xf32>
    %143 = arith.mulf %142, %141 : vector<16x16xf32>
    %144 = arith.addf %138, %143 : vector<16x16xf32>
    %c19_95 = arith.constant 19 : index
    %145 = memref.load %arg2[%c19_95] : memref<98xf32, #tpu.memory_space<smem>>
    %c0_96 = arith.constant 0 : index
    %c2_97 = arith.constant 2 : index
    %c5_98 = arith.constant 5 : index
    %146 = vector.load %arg4[%c0_96, %c2_97, %c5_98] : memref<2x22x22xf32, #tpu.memory_space<vmem>>, vector<1x16x16xf32>
    %147 = vector.shape_cast %146 : vector<1x16x16xf32> to vector<16x16xf32>
    %148 = vector.broadcast %145 : f32 to vector<16x16xf32>
    %149 = arith.mulf %148, %147 : vector<16x16xf32>
    %150 = arith.addf %144, %149 : vector<16x16xf32>
    %c20 = arith.constant 20 : index
    %151 = memref.load %arg2[%c20] : memref<98xf32, #tpu.memory_space<smem>>
    %c0_99 = arith.constant 0 : index
    %c2_100 = arith.constant 2 : index
    %c6_101 = arith.constant 6 : index
    %152 = vector.load %arg4[%c0_99, %c2_100, %c6_101] : memref<2x22x22xf32, #tpu.memory_space<vmem>>, vector<1x16x16xf32>
    %153 = vector.shape_cast %152 : vector<1x16x16xf32> to vector<16x16xf32>
    %154 = vector.broadcast %151 : f32 to vector<16x16xf32>
    %155 = arith.mulf %154, %153 : vector<16x16xf32>
    %156 = arith.addf %150, %155 : vector<16x16xf32>
    %c21 = arith.constant 21 : index
    %157 = memref.load %arg2[%c21] : memref<98xf32, #tpu.memory_space<smem>>
    %c0_102 = arith.constant 0 : index
    %c3_103 = arith.constant 3 : index
    %c0_104 = arith.constant 0 : index
    %158 = vector.load %arg4[%c0_102, %c3_103, %c0_104] : memref<2x22x22xf32, #tpu.memory_space<vmem>>, vector<1x16x16xf32>
    %159 = vector.shape_cast %158 : vector<1x16x16xf32> to vector<16x16xf32>
    %160 = vector.broadcast %157 : f32 to vector<16x16xf32>
    %161 = arith.mulf %160, %159 : vector<16x16xf32>
    %162 = arith.addf %156, %161 : vector<16x16xf32>
    %c22 = arith.constant 22 : index
    %163 = memref.load %arg2[%c22] : memref<98xf32, #tpu.memory_space<smem>>
    %c0_105 = arith.constant 0 : index
    %c3_106 = arith.constant 3 : index
    %c1_107 = arith.constant 1 : index
    %164 = vector.load %arg4[%c0_105, %c3_106, %c1_107] : memref<2x22x22xf32, #tpu.memory_space<vmem>>, vector<1x16x16xf32>
    %165 = vector.shape_cast %164 : vector<1x16x16xf32> to vector<16x16xf32>
    %166 = vector.broadcast %163 : f32 to vector<16x16xf32>
    %167 = arith.mulf %166, %165 : vector<16x16xf32>
    %168 = arith.addf %162, %167 : vector<16x16xf32>
    %c23 = arith.constant 23 : index
    %169 = memref.load %arg2[%c23] : memref<98xf32, #tpu.memory_space<smem>>
    %c0_108 = arith.constant 0 : index
    %c3_109 = arith.constant 3 : index
    %c2_110 = arith.constant 2 : index
    %170 = vector.load %arg4[%c0_108, %c3_109, %c2_110] : memref<2x22x22xf32, #tpu.memory_space<vmem>>, vector<1x16x16xf32>
    %171 = vector.shape_cast %170 : vector<1x16x16xf32> to vector<16x16xf32>
    %172 = vector.broadcast %169 : f32 to vector<16x16xf32>
    %173 = arith.mulf %172, %171 : vector<16x16xf32>
    %174 = arith.addf %168, %173 : vector<16x16xf32>
    %c24 = arith.constant 24 : index
    %175 = memref.load %arg2[%c24] : memref<98xf32, #tpu.memory_space<smem>>
    %c0_111 = arith.constant 0 : index
    %c3_112 = arith.constant 3 : index
    %c3_113 = arith.constant 3 : index
    %176 = vector.load %arg4[%c0_111, %c3_112, %c3_113] : memref<2x22x22xf32, #tpu.memory_space<vmem>>, vector<1x16x16xf32>
    %177 = vector.shape_cast %176 : vector<1x16x16xf32> to vector<16x16xf32>
    %178 = vector.broadcast %175 : f32 to vector<16x16xf32>
    %179 = arith.mulf %178, %177 : vector<16x16xf32>
    %180 = arith.addf %174, %179 : vector<16x16xf32>
    %c25 = arith.constant 25 : index
    %181 = memref.load %arg2[%c25] : memref<98xf32, #tpu.memory_space<smem>>
    %c0_114 = arith.constant 0 : index
    %c3_115 = arith.constant 3 : index
    %c4_116 = arith.constant 4 : index
    %182 = vector.load %arg4[%c0_114, %c3_115, %c4_116] : memref<2x22x22xf32, #tpu.memory_space<vmem>>, vector<1x16x16xf32>
    %183 = vector.shape_cast %182 : vector<1x16x16xf32> to vector<16x16xf32>
    %184 = vector.broadcast %181 : f32 to vector<16x16xf32>
    %185 = arith.mulf %184, %183 : vector<16x16xf32>
    %186 = arith.addf %180, %185 : vector<16x16xf32>
    %c26 = arith.constant 26 : index
    %187 = memref.load %arg2[%c26] : memref<98xf32, #tpu.memory_space<smem>>
    %c0_117 = arith.constant 0 : index
    %c3_118 = arith.constant 3 : index
    %c5_119 = arith.constant 5 : index
    %188 = vector.load %arg4[%c0_117, %c3_118, %c5_119] : memref<2x22x22xf32, #tpu.memory_space<vmem>>, vector<1x16x16xf32>
    %189 = vector.shape_cast %188 : vector<1x16x16xf32> to vector<16x16xf32>
    %190 = vector.broadcast %187 : f32 to vector<16x16xf32>
    %191 = arith.mulf %190, %189 : vector<16x16xf32>
    %192 = arith.addf %186, %191 : vector<16x16xf32>
    %c27 = arith.constant 27 : index
    %193 = memref.load %arg2[%c27] : memref<98xf32, #tpu.memory_space<smem>>
    %c0_120 = arith.constant 0 : index
    %c3_121 = arith.constant 3 : index
    %c6_122 = arith.constant 6 : index
    %194 = vector.load %arg4[%c0_120, %c3_121, %c6_122] : memref<2x22x22xf32, #tpu.memory_space<vmem>>, vector<1x16x16xf32>
    %195 = vector.shape_cast %194 : vector<1x16x16xf32> to vector<16x16xf32>
    %196 = vector.broadcast %193 : f32 to vector<16x16xf32>
    %197 = arith.mulf %196, %195 : vector<16x16xf32>
    %198 = arith.addf %192, %197 : vector<16x16xf32>
    %c28 = arith.constant 28 : index
    %199 = memref.load %arg2[%c28] : memref<98xf32, #tpu.memory_space<smem>>
    %c0_123 = arith.constant 0 : index
    %c4_124 = arith.constant 4 : index
    %c0_125 = arith.constant 0 : index
    %200 = vector.load %arg4[%c0_123, %c4_124, %c0_125] : memref<2x22x22xf32, #tpu.memory_space<vmem>>, vector<1x16x16xf32>
    %201 = vector.shape_cast %200 : vector<1x16x16xf32> to vector<16x16xf32>
    %202 = vector.broadcast %199 : f32 to vector<16x16xf32>
    %203 = arith.mulf %202, %201 : vector<16x16xf32>
    %204 = arith.addf %198, %203 : vector<16x16xf32>
    %c29 = arith.constant 29 : index
    %205 = memref.load %arg2[%c29] : memref<98xf32, #tpu.memory_space<smem>>
    %c0_126 = arith.constant 0 : index
    %c4_127 = arith.constant 4 : index
    %c1_128 = arith.constant 1 : index
    %206 = vector.load %arg4[%c0_126, %c4_127, %c1_128] : memref<2x22x22xf32, #tpu.memory_space<vmem>>, vector<1x16x16xf32>
    %207 = vector.shape_cast %206 : vector<1x16x16xf32> to vector<16x16xf32>
    %208 = vector.broadcast %205 : f32 to vector<16x16xf32>
    %209 = arith.mulf %208, %207 : vector<16x16xf32>
    %210 = arith.addf %204, %209 : vector<16x16xf32>
    %c30 = arith.constant 30 : index
    %211 = memref.load %arg2[%c30] : memref<98xf32, #tpu.memory_space<smem>>
    %c0_129 = arith.constant 0 : index
    %c4_130 = arith.constant 4 : index
    %c2_131 = arith.constant 2 : index
    %212 = vector.load %arg4[%c0_129, %c4_130, %c2_131] : memref<2x22x22xf32, #tpu.memory_space<vmem>>, vector<1x16x16xf32>
    %213 = vector.shape_cast %212 : vector<1x16x16xf32> to vector<16x16xf32>
    %214 = vector.broadcast %211 : f32 to vector<16x16xf32>
    %215 = arith.mulf %214, %213 : vector<16x16xf32>
    %216 = arith.addf %210, %215 : vector<16x16xf32>
    %c31 = arith.constant 31 : index
    %217 = memref.load %arg2[%c31] : memref<98xf32, #tpu.memory_space<smem>>
    %c0_132 = arith.constant 0 : index
    %c4_133 = arith.constant 4 : index
    %c3_134 = arith.constant 3 : index
    %218 = vector.load %arg4[%c0_132, %c4_133, %c3_134] : memref<2x22x22xf32, #tpu.memory_space<vmem>>, vector<1x16x16xf32>
    %219 = vector.shape_cast %218 : vector<1x16x16xf32> to vector<16x16xf32>
    %220 = vector.broadcast %217 : f32 to vector<16x16xf32>
    %221 = arith.mulf %220, %219 : vector<16x16xf32>
    %222 = arith.addf %216, %221 : vector<16x16xf32>
    %c32 = arith.constant 32 : index
    %223 = memref.load %arg2[%c32] : memref<98xf32, #tpu.memory_space<smem>>
    %c0_135 = arith.constant 0 : index
    %c4_136 = arith.constant 4 : index
    %c4_137 = arith.constant 4 : index
    %224 = vector.load %arg4[%c0_135, %c4_136, %c4_137] : memref<2x22x22xf32, #tpu.memory_space<vmem>>, vector<1x16x16xf32>
    %225 = vector.shape_cast %224 : vector<1x16x16xf32> to vector<16x16xf32>
    %226 = vector.broadcast %223 : f32 to vector<16x16xf32>
    %227 = arith.mulf %226, %225 : vector<16x16xf32>
    %228 = arith.addf %222, %227 : vector<16x16xf32>
    %c33 = arith.constant 33 : index
    %229 = memref.load %arg2[%c33] : memref<98xf32, #tpu.memory_space<smem>>
    %c0_138 = arith.constant 0 : index
    %c4_139 = arith.constant 4 : index
    %c5_140 = arith.constant 5 : index
    %230 = vector.load %arg4[%c0_138, %c4_139, %c5_140] : memref<2x22x22xf32, #tpu.memory_space<vmem>>, vector<1x16x16xf32>
    %231 = vector.shape_cast %230 : vector<1x16x16xf32> to vector<16x16xf32>
    %232 = vector.broadcast %229 : f32 to vector<16x16xf32>
    %233 = arith.mulf %232, %231 : vector<16x16xf32>
    %234 = arith.addf %228, %233 : vector<16x16xf32>
    %c34 = arith.constant 34 : index
    %235 = memref.load %arg2[%c34] : memref<98xf32, #tpu.memory_space<smem>>
    %c0_141 = arith.constant 0 : index
    %c4_142 = arith.constant 4 : index
    %c6_143 = arith.constant 6 : index
    %236 = vector.load %arg4[%c0_141, %c4_142, %c6_143] : memref<2x22x22xf32, #tpu.memory_space<vmem>>, vector<1x16x16xf32>
    %237 = vector.shape_cast %236 : vector<1x16x16xf32> to vector<16x16xf32>
    %238 = vector.broadcast %235 : f32 to vector<16x16xf32>
    %239 = arith.mulf %238, %237 : vector<16x16xf32>
    %240 = arith.addf %234, %239 : vector<16x16xf32>
    %c35 = arith.constant 35 : index
    %241 = memref.load %arg2[%c35] : memref<98xf32, #tpu.memory_space<smem>>
    %c0_144 = arith.constant 0 : index
    %c5_145 = arith.constant 5 : index
    %c0_146 = arith.constant 0 : index
    %242 = vector.load %arg4[%c0_144, %c5_145, %c0_146] : memref<2x22x22xf32, #tpu.memory_space<vmem>>, vector<1x16x16xf32>
    %243 = vector.shape_cast %242 : vector<1x16x16xf32> to vector<16x16xf32>
    %244 = vector.broadcast %241 : f32 to vector<16x16xf32>
    %245 = arith.mulf %244, %243 : vector<16x16xf32>
    %246 = arith.addf %240, %245 : vector<16x16xf32>
    %c36 = arith.constant 36 : index
    %247 = memref.load %arg2[%c36] : memref<98xf32, #tpu.memory_space<smem>>
    %c0_147 = arith.constant 0 : index
    %c5_148 = arith.constant 5 : index
    %c1_149 = arith.constant 1 : index
    %248 = vector.load %arg4[%c0_147, %c5_148, %c1_149] : memref<2x22x22xf32, #tpu.memory_space<vmem>>, vector<1x16x16xf32>
    %249 = vector.shape_cast %248 : vector<1x16x16xf32> to vector<16x16xf32>
    %250 = vector.broadcast %247 : f32 to vector<16x16xf32>
    %251 = arith.mulf %250, %249 : vector<16x16xf32>
    %252 = arith.addf %246, %251 : vector<16x16xf32>
    %c37 = arith.constant 37 : index
    %253 = memref.load %arg2[%c37] : memref<98xf32, #tpu.memory_space<smem>>
    %c0_150 = arith.constant 0 : index
    %c5_151 = arith.constant 5 : index
    %c2_152 = arith.constant 2 : index
    %254 = vector.load %arg4[%c0_150, %c5_151, %c2_152] : memref<2x22x22xf32, #tpu.memory_space<vmem>>, vector<1x16x16xf32>
    %255 = vector.shape_cast %254 : vector<1x16x16xf32> to vector<16x16xf32>
    %256 = vector.broadcast %253 : f32 to vector<16x16xf32>
    %257 = arith.mulf %256, %255 : vector<16x16xf32>
    %258 = arith.addf %252, %257 : vector<16x16xf32>
    %c38 = arith.constant 38 : index
    %259 = memref.load %arg2[%c38] : memref<98xf32, #tpu.memory_space<smem>>
    %c0_153 = arith.constant 0 : index
    %c5_154 = arith.constant 5 : index
    %c3_155 = arith.constant 3 : index
    %260 = vector.load %arg4[%c0_153, %c5_154, %c3_155] : memref<2x22x22xf32, #tpu.memory_space<vmem>>, vector<1x16x16xf32>
    %261 = vector.shape_cast %260 : vector<1x16x16xf32> to vector<16x16xf32>
    %262 = vector.broadcast %259 : f32 to vector<16x16xf32>
    %263 = arith.mulf %262, %261 : vector<16x16xf32>
    %264 = arith.addf %258, %263 : vector<16x16xf32>
    %c39 = arith.constant 39 : index
    %265 = memref.load %arg2[%c39] : memref<98xf32, #tpu.memory_space<smem>>
    %c0_156 = arith.constant 0 : index
    %c5_157 = arith.constant 5 : index
    %c4_158 = arith.constant 4 : index
    %266 = vector.load %arg4[%c0_156, %c5_157, %c4_158] : memref<2x22x22xf32, #tpu.memory_space<vmem>>, vector<1x16x16xf32>
    %267 = vector.shape_cast %266 : vector<1x16x16xf32> to vector<16x16xf32>
    %268 = vector.broadcast %265 : f32 to vector<16x16xf32>
    %269 = arith.mulf %268, %267 : vector<16x16xf32>
    %270 = arith.addf %264, %269 : vector<16x16xf32>
    %c40 = arith.constant 40 : index
    %271 = memref.load %arg2[%c40] : memref<98xf32, #tpu.memory_space<smem>>
    %c0_159 = arith.constant 0 : index
    %c5_160 = arith.constant 5 : index
    %c5_161 = arith.constant 5 : index
    %272 = vector.load %arg4[%c0_159, %c5_160, %c5_161] : memref<2x22x22xf32, #tpu.memory_space<vmem>>, vector<1x16x16xf32>
    %273 = vector.shape_cast %272 : vector<1x16x16xf32> to vector<16x16xf32>
    %274 = vector.broadcast %271 : f32 to vector<16x16xf32>
    %275 = arith.mulf %274, %273 : vector<16x16xf32>
    %276 = arith.addf %270, %275 : vector<16x16xf32>
    %c41 = arith.constant 41 : index
    %277 = memref.load %arg2[%c41] : memref<98xf32, #tpu.memory_space<smem>>
    %c0_162 = arith.constant 0 : index
    %c5_163 = arith.constant 5 : index
    %c6_164 = arith.constant 6 : index
    %278 = vector.load %arg4[%c0_162, %c5_163, %c6_164] : memref<2x22x22xf32, #tpu.memory_space<vmem>>, vector<1x16x16xf32>
    %279 = vector.shape_cast %278 : vector<1x16x16xf32> to vector<16x16xf32>
    %280 = vector.broadcast %277 : f32 to vector<16x16xf32>
    %281 = arith.mulf %280, %279 : vector<16x16xf32>
    %282 = arith.addf %276, %281 : vector<16x16xf32>
    %c42 = arith.constant 42 : index
    %283 = memref.load %arg2[%c42] : memref<98xf32, #tpu.memory_space<smem>>
    %c0_165 = arith.constant 0 : index
    %c6_166 = arith.constant 6 : index
    %c0_167 = arith.constant 0 : index
    %284 = vector.load %arg4[%c0_165, %c6_166, %c0_167] : memref<2x22x22xf32, #tpu.memory_space<vmem>>, vector<1x16x16xf32>
    %285 = vector.shape_cast %284 : vector<1x16x16xf32> to vector<16x16xf32>
    %286 = vector.broadcast %283 : f32 to vector<16x16xf32>
    %287 = arith.mulf %286, %285 : vector<16x16xf32>
    %288 = arith.addf %282, %287 : vector<16x16xf32>
    %c43 = arith.constant 43 : index
    %289 = memref.load %arg2[%c43] : memref<98xf32, #tpu.memory_space<smem>>
    %c0_168 = arith.constant 0 : index
    %c6_169 = arith.constant 6 : index
    %c1_170 = arith.constant 1 : index
    %290 = vector.load %arg4[%c0_168, %c6_169, %c1_170] : memref<2x22x22xf32, #tpu.memory_space<vmem>>, vector<1x16x16xf32>
    %291 = vector.shape_cast %290 : vector<1x16x16xf32> to vector<16x16xf32>
    %292 = vector.broadcast %289 : f32 to vector<16x16xf32>
    %293 = arith.mulf %292, %291 : vector<16x16xf32>
    %294 = arith.addf %288, %293 : vector<16x16xf32>
    %c44 = arith.constant 44 : index
    %295 = memref.load %arg2[%c44] : memref<98xf32, #tpu.memory_space<smem>>
    %c0_171 = arith.constant 0 : index
    %c6_172 = arith.constant 6 : index
    %c2_173 = arith.constant 2 : index
    %296 = vector.load %arg4[%c0_171, %c6_172, %c2_173] : memref<2x22x22xf32, #tpu.memory_space<vmem>>, vector<1x16x16xf32>
    %297 = vector.shape_cast %296 : vector<1x16x16xf32> to vector<16x16xf32>
    %298 = vector.broadcast %295 : f32 to vector<16x16xf32>
    %299 = arith.mulf %298, %297 : vector<16x16xf32>
    %300 = arith.addf %294, %299 : vector<16x16xf32>
    %c45 = arith.constant 45 : index
    %301 = memref.load %arg2[%c45] : memref<98xf32, #tpu.memory_space<smem>>
    %c0_174 = arith.constant 0 : index
    %c6_175 = arith.constant 6 : index
    %c3_176 = arith.constant 3 : index
    %302 = vector.load %arg4[%c0_174, %c6_175, %c3_176] : memref<2x22x22xf32, #tpu.memory_space<vmem>>, vector<1x16x16xf32>
    %303 = vector.shape_cast %302 : vector<1x16x16xf32> to vector<16x16xf32>
    %304 = vector.broadcast %301 : f32 to vector<16x16xf32>
    %305 = arith.mulf %304, %303 : vector<16x16xf32>
    %306 = arith.addf %300, %305 : vector<16x16xf32>
    %c46 = arith.constant 46 : index
    %307 = memref.load %arg2[%c46] : memref<98xf32, #tpu.memory_space<smem>>
    %c0_177 = arith.constant 0 : index
    %c6_178 = arith.constant 6 : index
    %c4_179 = arith.constant 4 : index
    %308 = vector.load %arg4[%c0_177, %c6_178, %c4_179] : memref<2x22x22xf32, #tpu.memory_space<vmem>>, vector<1x16x16xf32>
    %309 = vector.shape_cast %308 : vector<1x16x16xf32> to vector<16x16xf32>
    %310 = vector.broadcast %307 : f32 to vector<16x16xf32>
    %311 = arith.mulf %310, %309 : vector<16x16xf32>
    %312 = arith.addf %306, %311 : vector<16x16xf32>
    %c47 = arith.constant 47 : index
    %313 = memref.load %arg2[%c47] : memref<98xf32, #tpu.memory_space<smem>>
    %c0_180 = arith.constant 0 : index
    %c6_181 = arith.constant 6 : index
    %c5_182 = arith.constant 5 : index
    %314 = vector.load %arg4[%c0_180, %c6_181, %c5_182] : memref<2x22x22xf32, #tpu.memory_space<vmem>>, vector<1x16x16xf32>
    %315 = vector.shape_cast %314 : vector<1x16x16xf32> to vector<16x16xf32>
    %316 = vector.broadcast %313 : f32 to vector<16x16xf32>
    %317 = arith.mulf %316, %315 : vector<16x16xf32>
    %318 = arith.addf %312, %317 : vector<16x16xf32>
    %c48 = arith.constant 48 : index
    %319 = memref.load %arg2[%c48] : memref<98xf32, #tpu.memory_space<smem>>
    %c0_183 = arith.constant 0 : index
    %c6_184 = arith.constant 6 : index
    %c6_185 = arith.constant 6 : index
    %320 = vector.load %arg4[%c0_183, %c6_184, %c6_185] : memref<2x22x22xf32, #tpu.memory_space<vmem>>, vector<1x16x16xf32>
    %321 = vector.shape_cast %320 : vector<1x16x16xf32> to vector<16x16xf32>
    %322 = vector.broadcast %319 : f32 to vector<16x16xf32>
    %323 = arith.mulf %322, %321 : vector<16x16xf32>
    %324 = arith.addf %318, %323 : vector<16x16xf32>
    %c49 = arith.constant 49 : index
    %325 = memref.load %arg2[%c49] : memref<98xf32, #tpu.memory_space<smem>>
    %c1_186 = arith.constant 1 : index
    %c0_187 = arith.constant 0 : index
    %c0_188 = arith.constant 0 : index
    %326 = vector.load %arg4[%c1_186, %c0_187, %c0_188] : memref<2x22x22xf32, #tpu.memory_space<vmem>>, vector<1x16x16xf32>
    %327 = vector.shape_cast %326 : vector<1x16x16xf32> to vector<16x16xf32>
    %328 = vector.broadcast %325 : f32 to vector<16x16xf32>
    %329 = arith.mulf %328, %327 : vector<16x16xf32>
    %330 = arith.addf %324, %329 : vector<16x16xf32>
    %c50 = arith.constant 50 : index
    %331 = memref.load %arg2[%c50] : memref<98xf32, #tpu.memory_space<smem>>
    %c1_189 = arith.constant 1 : index
    %c0_190 = arith.constant 0 : index
    %c1_191 = arith.constant 1 : index
    %332 = vector.load %arg4[%c1_189, %c0_190, %c1_191] : memref<2x22x22xf32, #tpu.memory_space<vmem>>, vector<1x16x16xf32>
    %333 = vector.shape_cast %332 : vector<1x16x16xf32> to vector<16x16xf32>
    %334 = vector.broadcast %331 : f32 to vector<16x16xf32>
    %335 = arith.mulf %334, %333 : vector<16x16xf32>
    %336 = arith.addf %330, %335 : vector<16x16xf32>
    %c51 = arith.constant 51 : index
    %337 = memref.load %arg2[%c51] : memref<98xf32, #tpu.memory_space<smem>>
    %c1_192 = arith.constant 1 : index
    %c0_193 = arith.constant 0 : index
    %c2_194 = arith.constant 2 : index
    %338 = vector.load %arg4[%c1_192, %c0_193, %c2_194] : memref<2x22x22xf32, #tpu.memory_space<vmem>>, vector<1x16x16xf32>
    %339 = vector.shape_cast %338 : vector<1x16x16xf32> to vector<16x16xf32>
    %340 = vector.broadcast %337 : f32 to vector<16x16xf32>
    %341 = arith.mulf %340, %339 : vector<16x16xf32>
    %342 = arith.addf %336, %341 : vector<16x16xf32>
    %c52 = arith.constant 52 : index
    %343 = memref.load %arg2[%c52] : memref<98xf32, #tpu.memory_space<smem>>
    %c1_195 = arith.constant 1 : index
    %c0_196 = arith.constant 0 : index
    %c3_197 = arith.constant 3 : index
    %344 = vector.load %arg4[%c1_195, %c0_196, %c3_197] : memref<2x22x22xf32, #tpu.memory_space<vmem>>, vector<1x16x16xf32>
    %345 = vector.shape_cast %344 : vector<1x16x16xf32> to vector<16x16xf32>
    %346 = vector.broadcast %343 : f32 to vector<16x16xf32>
    %347 = arith.mulf %346, %345 : vector<16x16xf32>
    %348 = arith.addf %342, %347 : vector<16x16xf32>
    %c53 = arith.constant 53 : index
    %349 = memref.load %arg2[%c53] : memref<98xf32, #tpu.memory_space<smem>>
    %c1_198 = arith.constant 1 : index
    %c0_199 = arith.constant 0 : index
    %c4_200 = arith.constant 4 : index
    %350 = vector.load %arg4[%c1_198, %c0_199, %c4_200] : memref<2x22x22xf32, #tpu.memory_space<vmem>>, vector<1x16x16xf32>
    %351 = vector.shape_cast %350 : vector<1x16x16xf32> to vector<16x16xf32>
    %352 = vector.broadcast %349 : f32 to vector<16x16xf32>
    %353 = arith.mulf %352, %351 : vector<16x16xf32>
    %354 = arith.addf %348, %353 : vector<16x16xf32>
    %c54 = arith.constant 54 : index
    %355 = memref.load %arg2[%c54] : memref<98xf32, #tpu.memory_space<smem>>
    %c1_201 = arith.constant 1 : index
    %c0_202 = arith.constant 0 : index
    %c5_203 = arith.constant 5 : index
    %356 = vector.load %arg4[%c1_201, %c0_202, %c5_203] : memref<2x22x22xf32, #tpu.memory_space<vmem>>, vector<1x16x16xf32>
    %357 = vector.shape_cast %356 : vector<1x16x16xf32> to vector<16x16xf32>
    %358 = vector.broadcast %355 : f32 to vector<16x16xf32>
    %359 = arith.mulf %358, %357 : vector<16x16xf32>
    %360 = arith.addf %354, %359 : vector<16x16xf32>
    %c55 = arith.constant 55 : index
    %361 = memref.load %arg2[%c55] : memref<98xf32, #tpu.memory_space<smem>>
    %c1_204 = arith.constant 1 : index
    %c0_205 = arith.constant 0 : index
    %c6_206 = arith.constant 6 : index
    %362 = vector.load %arg4[%c1_204, %c0_205, %c6_206] : memref<2x22x22xf32, #tpu.memory_space<vmem>>, vector<1x16x16xf32>
    %363 = vector.shape_cast %362 : vector<1x16x16xf32> to vector<16x16xf32>
    %364 = vector.broadcast %361 : f32 to vector<16x16xf32>
    %365 = arith.mulf %364, %363 : vector<16x16xf32>
    %366 = arith.addf %360, %365 : vector<16x16xf32>
    %c56 = arith.constant 56 : index
    %367 = memref.load %arg2[%c56] : memref<98xf32, #tpu.memory_space<smem>>
    %c1_207 = arith.constant 1 : index
    %c1_208 = arith.constant 1 : index
    %c0_209 = arith.constant 0 : index
    %368 = vector.load %arg4[%c1_207, %c1_208, %c0_209] : memref<2x22x22xf32, #tpu.memory_space<vmem>>, vector<1x16x16xf32>
    %369 = vector.shape_cast %368 : vector<1x16x16xf32> to vector<16x16xf32>
    %370 = vector.broadcast %367 : f32 to vector<16x16xf32>
    %371 = arith.mulf %370, %369 : vector<16x16xf32>
    %372 = arith.addf %366, %371 : vector<16x16xf32>
    %c57 = arith.constant 57 : index
    %373 = memref.load %arg2[%c57] : memref<98xf32, #tpu.memory_space<smem>>
    %c1_210 = arith.constant 1 : index
    %c1_211 = arith.constant 1 : index
    %c1_212 = arith.constant 1 : index
    %374 = vector.load %arg4[%c1_210, %c1_211, %c1_212] : memref<2x22x22xf32, #tpu.memory_space<vmem>>, vector<1x16x16xf32>
    %375 = vector.shape_cast %374 : vector<1x16x16xf32> to vector<16x16xf32>
    %376 = vector.broadcast %373 : f32 to vector<16x16xf32>
    %377 = arith.mulf %376, %375 : vector<16x16xf32>
    %378 = arith.addf %372, %377 : vector<16x16xf32>
    %c58 = arith.constant 58 : index
    %379 = memref.load %arg2[%c58] : memref<98xf32, #tpu.memory_space<smem>>
    %c1_213 = arith.constant 1 : index
    %c1_214 = arith.constant 1 : index
    %c2_215 = arith.constant 2 : index
    %380 = vector.load %arg4[%c1_213, %c1_214, %c2_215] : memref<2x22x22xf32, #tpu.memory_space<vmem>>, vector<1x16x16xf32>
    %381 = vector.shape_cast %380 : vector<1x16x16xf32> to vector<16x16xf32>
    %382 = vector.broadcast %379 : f32 to vector<16x16xf32>
    %383 = arith.mulf %382, %381 : vector<16x16xf32>
    %384 = arith.addf %378, %383 : vector<16x16xf32>
    %c59 = arith.constant 59 : index
    %385 = memref.load %arg2[%c59] : memref<98xf32, #tpu.memory_space<smem>>
    %c1_216 = arith.constant 1 : index
    %c1_217 = arith.constant 1 : index
    %c3_218 = arith.constant 3 : index
    %386 = vector.load %arg4[%c1_216, %c1_217, %c3_218] : memref<2x22x22xf32, #tpu.memory_space<vmem>>, vector<1x16x16xf32>
    %387 = vector.shape_cast %386 : vector<1x16x16xf32> to vector<16x16xf32>
    %388 = vector.broadcast %385 : f32 to vector<16x16xf32>
    %389 = arith.mulf %388, %387 : vector<16x16xf32>
    %390 = arith.addf %384, %389 : vector<16x16xf32>
    %c60 = arith.constant 60 : index
    %391 = memref.load %arg2[%c60] : memref<98xf32, #tpu.memory_space<smem>>
    %c1_219 = arith.constant 1 : index
    %c1_220 = arith.constant 1 : index
    %c4_221 = arith.constant 4 : index
    %392 = vector.load %arg4[%c1_219, %c1_220, %c4_221] : memref<2x22x22xf32, #tpu.memory_space<vmem>>, vector<1x16x16xf32>
    %393 = vector.shape_cast %392 : vector<1x16x16xf32> to vector<16x16xf32>
    %394 = vector.broadcast %391 : f32 to vector<16x16xf32>
    %395 = arith.mulf %394, %393 : vector<16x16xf32>
    %396 = arith.addf %390, %395 : vector<16x16xf32>
    %c61 = arith.constant 61 : index
    %397 = memref.load %arg2[%c61] : memref<98xf32, #tpu.memory_space<smem>>
    %c1_222 = arith.constant 1 : index
    %c1_223 = arith.constant 1 : index
    %c5_224 = arith.constant 5 : index
    %398 = vector.load %arg4[%c1_222, %c1_223, %c5_224] : memref<2x22x22xf32, #tpu.memory_space<vmem>>, vector<1x16x16xf32>
    %399 = vector.shape_cast %398 : vector<1x16x16xf32> to vector<16x16xf32>
    %400 = vector.broadcast %397 : f32 to vector<16x16xf32>
    %401 = arith.mulf %400, %399 : vector<16x16xf32>
    %402 = arith.addf %396, %401 : vector<16x16xf32>
    %c62 = arith.constant 62 : index
    %403 = memref.load %arg2[%c62] : memref<98xf32, #tpu.memory_space<smem>>
    %c1_225 = arith.constant 1 : index
    %c1_226 = arith.constant 1 : index
    %c6_227 = arith.constant 6 : index
    %404 = vector.load %arg4[%c1_225, %c1_226, %c6_227] : memref<2x22x22xf32, #tpu.memory_space<vmem>>, vector<1x16x16xf32>
    %405 = vector.shape_cast %404 : vector<1x16x16xf32> to vector<16x16xf32>
    %406 = vector.broadcast %403 : f32 to vector<16x16xf32>
    %407 = arith.mulf %406, %405 : vector<16x16xf32>
    %408 = arith.addf %402, %407 : vector<16x16xf32>
    %c63 = arith.constant 63 : index
    %409 = memref.load %arg2[%c63] : memref<98xf32, #tpu.memory_space<smem>>
    %c1_228 = arith.constant 1 : index
    %c2_229 = arith.constant 2 : index
    %c0_230 = arith.constant 0 : index
    %410 = vector.load %arg4[%c1_228, %c2_229, %c0_230] : memref<2x22x22xf32, #tpu.memory_space<vmem>>, vector<1x16x16xf32>
    %411 = vector.shape_cast %410 : vector<1x16x16xf32> to vector<16x16xf32>
    %412 = vector.broadcast %409 : f32 to vector<16x16xf32>
    %413 = arith.mulf %412, %411 : vector<16x16xf32>
    %414 = arith.addf %408, %413 : vector<16x16xf32>
    %c64 = arith.constant 64 : index
    %415 = memref.load %arg2[%c64] : memref<98xf32, #tpu.memory_space<smem>>
    %c1_231 = arith.constant 1 : index
    %c2_232 = arith.constant 2 : index
    %c1_233 = arith.constant 1 : index
    %416 = vector.load %arg4[%c1_231, %c2_232, %c1_233] : memref<2x22x22xf32, #tpu.memory_space<vmem>>, vector<1x16x16xf32>
    %417 = vector.shape_cast %416 : vector<1x16x16xf32> to vector<16x16xf32>
    %418 = vector.broadcast %415 : f32 to vector<16x16xf32>
    %419 = arith.mulf %418, %417 : vector<16x16xf32>
    %420 = arith.addf %414, %419 : vector<16x16xf32>
    %c65 = arith.constant 65 : index
    %421 = memref.load %arg2[%c65] : memref<98xf32, #tpu.memory_space<smem>>
    %c1_234 = arith.constant 1 : index
    %c2_235 = arith.constant 2 : index
    %c2_236 = arith.constant 2 : index
    %422 = vector.load %arg4[%c1_234, %c2_235, %c2_236] : memref<2x22x22xf32, #tpu.memory_space<vmem>>, vector<1x16x16xf32>
    %423 = vector.shape_cast %422 : vector<1x16x16xf32> to vector<16x16xf32>
    %424 = vector.broadcast %421 : f32 to vector<16x16xf32>
    %425 = arith.mulf %424, %423 : vector<16x16xf32>
    %426 = arith.addf %420, %425 : vector<16x16xf32>
    %c66 = arith.constant 66 : index
    %427 = memref.load %arg2[%c66] : memref<98xf32, #tpu.memory_space<smem>>
    %c1_237 = arith.constant 1 : index
    %c2_238 = arith.constant 2 : index
    %c3_239 = arith.constant 3 : index
    %428 = vector.load %arg4[%c1_237, %c2_238, %c3_239] : memref<2x22x22xf32, #tpu.memory_space<vmem>>, vector<1x16x16xf32>
    %429 = vector.shape_cast %428 : vector<1x16x16xf32> to vector<16x16xf32>
    %430 = vector.broadcast %427 : f32 to vector<16x16xf32>
    %431 = arith.mulf %430, %429 : vector<16x16xf32>
    %432 = arith.addf %426, %431 : vector<16x16xf32>
    %c67 = arith.constant 67 : index
    %433 = memref.load %arg2[%c67] : memref<98xf32, #tpu.memory_space<smem>>
    %c1_240 = arith.constant 1 : index
    %c2_241 = arith.constant 2 : index
    %c4_242 = arith.constant 4 : index
    %434 = vector.load %arg4[%c1_240, %c2_241, %c4_242] : memref<2x22x22xf32, #tpu.memory_space<vmem>>, vector<1x16x16xf32>
    %435 = vector.shape_cast %434 : vector<1x16x16xf32> to vector<16x16xf32>
    %436 = vector.broadcast %433 : f32 to vector<16x16xf32>
    %437 = arith.mulf %436, %435 : vector<16x16xf32>
    %438 = arith.addf %432, %437 : vector<16x16xf32>
    %c68 = arith.constant 68 : index
    %439 = memref.load %arg2[%c68] : memref<98xf32, #tpu.memory_space<smem>>
    %c1_243 = arith.constant 1 : index
    %c2_244 = arith.constant 2 : index
    %c5_245 = arith.constant 5 : index
    %440 = vector.load %arg4[%c1_243, %c2_244, %c5_245] : memref<2x22x22xf32, #tpu.memory_space<vmem>>, vector<1x16x16xf32>
    %441 = vector.shape_cast %440 : vector<1x16x16xf32> to vector<16x16xf32>
    %442 = vector.broadcast %439 : f32 to vector<16x16xf32>
    %443 = arith.mulf %442, %441 : vector<16x16xf32>
    %444 = arith.addf %438, %443 : vector<16x16xf32>
    %c69 = arith.constant 69 : index
    %445 = memref.load %arg2[%c69] : memref<98xf32, #tpu.memory_space<smem>>
    %c1_246 = arith.constant 1 : index
    %c2_247 = arith.constant 2 : index
    %c6_248 = arith.constant 6 : index
    %446 = vector.load %arg4[%c1_246, %c2_247, %c6_248] : memref<2x22x22xf32, #tpu.memory_space<vmem>>, vector<1x16x16xf32>
    %447 = vector.shape_cast %446 : vector<1x16x16xf32> to vector<16x16xf32>
    %448 = vector.broadcast %445 : f32 to vector<16x16xf32>
    %449 = arith.mulf %448, %447 : vector<16x16xf32>
    %450 = arith.addf %444, %449 : vector<16x16xf32>
    %c70 = arith.constant 70 : index
    %451 = memref.load %arg2[%c70] : memref<98xf32, #tpu.memory_space<smem>>
    %c1_249 = arith.constant 1 : index
    %c3_250 = arith.constant 3 : index
    %c0_251 = arith.constant 0 : index
    %452 = vector.load %arg4[%c1_249, %c3_250, %c0_251] : memref<2x22x22xf32, #tpu.memory_space<vmem>>, vector<1x16x16xf32>
    %453 = vector.shape_cast %452 : vector<1x16x16xf32> to vector<16x16xf32>
    %454 = vector.broadcast %451 : f32 to vector<16x16xf32>
    %455 = arith.mulf %454, %453 : vector<16x16xf32>
    %456 = arith.addf %450, %455 : vector<16x16xf32>
    %c71 = arith.constant 71 : index
    %457 = memref.load %arg2[%c71] : memref<98xf32, #tpu.memory_space<smem>>
    %c1_252 = arith.constant 1 : index
    %c3_253 = arith.constant 3 : index
    %c1_254 = arith.constant 1 : index
    %458 = vector.load %arg4[%c1_252, %c3_253, %c1_254] : memref<2x22x22xf32, #tpu.memory_space<vmem>>, vector<1x16x16xf32>
    %459 = vector.shape_cast %458 : vector<1x16x16xf32> to vector<16x16xf32>
    %460 = vector.broadcast %457 : f32 to vector<16x16xf32>
    %461 = arith.mulf %460, %459 : vector<16x16xf32>
    %462 = arith.addf %456, %461 : vector<16x16xf32>
    %c72 = arith.constant 72 : index
    %463 = memref.load %arg2[%c72] : memref<98xf32, #tpu.memory_space<smem>>
    %c1_255 = arith.constant 1 : index
    %c3_256 = arith.constant 3 : index
    %c2_257 = arith.constant 2 : index
    %464 = vector.load %arg4[%c1_255, %c3_256, %c2_257] : memref<2x22x22xf32, #tpu.memory_space<vmem>>, vector<1x16x16xf32>
    %465 = vector.shape_cast %464 : vector<1x16x16xf32> to vector<16x16xf32>
    %466 = vector.broadcast %463 : f32 to vector<16x16xf32>
    %467 = arith.mulf %466, %465 : vector<16x16xf32>
    %468 = arith.addf %462, %467 : vector<16x16xf32>
    %c73 = arith.constant 73 : index
    %469 = memref.load %arg2[%c73] : memref<98xf32, #tpu.memory_space<smem>>
    %c1_258 = arith.constant 1 : index
    %c3_259 = arith.constant 3 : index
    %c3_260 = arith.constant 3 : index
    %470 = vector.load %arg4[%c1_258, %c3_259, %c3_260] : memref<2x22x22xf32, #tpu.memory_space<vmem>>, vector<1x16x16xf32>
    %471 = vector.shape_cast %470 : vector<1x16x16xf32> to vector<16x16xf32>
    %472 = vector.broadcast %469 : f32 to vector<16x16xf32>
    %473 = arith.mulf %472, %471 : vector<16x16xf32>
    %474 = arith.addf %468, %473 : vector<16x16xf32>
    %c74 = arith.constant 74 : index
    %475 = memref.load %arg2[%c74] : memref<98xf32, #tpu.memory_space<smem>>
    %c1_261 = arith.constant 1 : index
    %c3_262 = arith.constant 3 : index
    %c4_263 = arith.constant 4 : index
    %476 = vector.load %arg4[%c1_261, %c3_262, %c4_263] : memref<2x22x22xf32, #tpu.memory_space<vmem>>, vector<1x16x16xf32>
    %477 = vector.shape_cast %476 : vector<1x16x16xf32> to vector<16x16xf32>
    %478 = vector.broadcast %475 : f32 to vector<16x16xf32>
    %479 = arith.mulf %478, %477 : vector<16x16xf32>
    %480 = arith.addf %474, %479 : vector<16x16xf32>
    %c75 = arith.constant 75 : index
    %481 = memref.load %arg2[%c75] : memref<98xf32, #tpu.memory_space<smem>>
    %c1_264 = arith.constant 1 : index
    %c3_265 = arith.constant 3 : index
    %c5_266 = arith.constant 5 : index
    %482 = vector.load %arg4[%c1_264, %c3_265, %c5_266] : memref<2x22x22xf32, #tpu.memory_space<vmem>>, vector<1x16x16xf32>
    %483 = vector.shape_cast %482 : vector<1x16x16xf32> to vector<16x16xf32>
    %484 = vector.broadcast %481 : f32 to vector<16x16xf32>
    %485 = arith.mulf %484, %483 : vector<16x16xf32>
    %486 = arith.addf %480, %485 : vector<16x16xf32>
    %c76 = arith.constant 76 : index
    %487 = memref.load %arg2[%c76] : memref<98xf32, #tpu.memory_space<smem>>
    %c1_267 = arith.constant 1 : index
    %c3_268 = arith.constant 3 : index
    %c6_269 = arith.constant 6 : index
    %488 = vector.load %arg4[%c1_267, %c3_268, %c6_269] : memref<2x22x22xf32, #tpu.memory_space<vmem>>, vector<1x16x16xf32>
    %489 = vector.shape_cast %488 : vector<1x16x16xf32> to vector<16x16xf32>
    %490 = vector.broadcast %487 : f32 to vector<16x16xf32>
    %491 = arith.mulf %490, %489 : vector<16x16xf32>
    %492 = arith.addf %486, %491 : vector<16x16xf32>
    %c77 = arith.constant 77 : index
    %493 = memref.load %arg2[%c77] : memref<98xf32, #tpu.memory_space<smem>>
    %c1_270 = arith.constant 1 : index
    %c4_271 = arith.constant 4 : index
    %c0_272 = arith.constant 0 : index
    %494 = vector.load %arg4[%c1_270, %c4_271, %c0_272] : memref<2x22x22xf32, #tpu.memory_space<vmem>>, vector<1x16x16xf32>
    %495 = vector.shape_cast %494 : vector<1x16x16xf32> to vector<16x16xf32>
    %496 = vector.broadcast %493 : f32 to vector<16x16xf32>
    %497 = arith.mulf %496, %495 : vector<16x16xf32>
    %498 = arith.addf %492, %497 : vector<16x16xf32>
    %c78 = arith.constant 78 : index
    %499 = memref.load %arg2[%c78] : memref<98xf32, #tpu.memory_space<smem>>
    %c1_273 = arith.constant 1 : index
    %c4_274 = arith.constant 4 : index
    %c1_275 = arith.constant 1 : index
    %500 = vector.load %arg4[%c1_273, %c4_274, %c1_275] : memref<2x22x22xf32, #tpu.memory_space<vmem>>, vector<1x16x16xf32>
    %501 = vector.shape_cast %500 : vector<1x16x16xf32> to vector<16x16xf32>
    %502 = vector.broadcast %499 : f32 to vector<16x16xf32>
    %503 = arith.mulf %502, %501 : vector<16x16xf32>
    %504 = arith.addf %498, %503 : vector<16x16xf32>
    %c79 = arith.constant 79 : index
    %505 = memref.load %arg2[%c79] : memref<98xf32, #tpu.memory_space<smem>>
    %c1_276 = arith.constant 1 : index
    %c4_277 = arith.constant 4 : index
    %c2_278 = arith.constant 2 : index
    %506 = vector.load %arg4[%c1_276, %c4_277, %c2_278] : memref<2x22x22xf32, #tpu.memory_space<vmem>>, vector<1x16x16xf32>
    %507 = vector.shape_cast %506 : vector<1x16x16xf32> to vector<16x16xf32>
    %508 = vector.broadcast %505 : f32 to vector<16x16xf32>
    %509 = arith.mulf %508, %507 : vector<16x16xf32>
    %510 = arith.addf %504, %509 : vector<16x16xf32>
    %c80 = arith.constant 80 : index
    %511 = memref.load %arg2[%c80] : memref<98xf32, #tpu.memory_space<smem>>
    %c1_279 = arith.constant 1 : index
    %c4_280 = arith.constant 4 : index
    %c3_281 = arith.constant 3 : index
    %512 = vector.load %arg4[%c1_279, %c4_280, %c3_281] : memref<2x22x22xf32, #tpu.memory_space<vmem>>, vector<1x16x16xf32>
    %513 = vector.shape_cast %512 : vector<1x16x16xf32> to vector<16x16xf32>
    %514 = vector.broadcast %511 : f32 to vector<16x16xf32>
    %515 = arith.mulf %514, %513 : vector<16x16xf32>
    %516 = arith.addf %510, %515 : vector<16x16xf32>
    %c81 = arith.constant 81 : index
    %517 = memref.load %arg2[%c81] : memref<98xf32, #tpu.memory_space<smem>>
    %c1_282 = arith.constant 1 : index
    %c4_283 = arith.constant 4 : index
    %c4_284 = arith.constant 4 : index
    %518 = vector.load %arg4[%c1_282, %c4_283, %c4_284] : memref<2x22x22xf32, #tpu.memory_space<vmem>>, vector<1x16x16xf32>
    %519 = vector.shape_cast %518 : vector<1x16x16xf32> to vector<16x16xf32>
    %520 = vector.broadcast %517 : f32 to vector<16x16xf32>
    %521 = arith.mulf %520, %519 : vector<16x16xf32>
    %522 = arith.addf %516, %521 : vector<16x16xf32>
    %c82 = arith.constant 82 : index
    %523 = memref.load %arg2[%c82] : memref<98xf32, #tpu.memory_space<smem>>
    %c1_285 = arith.constant 1 : index
    %c4_286 = arith.constant 4 : index
    %c5_287 = arith.constant 5 : index
    %524 = vector.load %arg4[%c1_285, %c4_286, %c5_287] : memref<2x22x22xf32, #tpu.memory_space<vmem>>, vector<1x16x16xf32>
    %525 = vector.shape_cast %524 : vector<1x16x16xf32> to vector<16x16xf32>
    %526 = vector.broadcast %523 : f32 to vector<16x16xf32>
    %527 = arith.mulf %526, %525 : vector<16x16xf32>
    %528 = arith.addf %522, %527 : vector<16x16xf32>
    %c83 = arith.constant 83 : index
    %529 = memref.load %arg2[%c83] : memref<98xf32, #tpu.memory_space<smem>>
    %c1_288 = arith.constant 1 : index
    %c4_289 = arith.constant 4 : index
    %c6_290 = arith.constant 6 : index
    %530 = vector.load %arg4[%c1_288, %c4_289, %c6_290] : memref<2x22x22xf32, #tpu.memory_space<vmem>>, vector<1x16x16xf32>
    %531 = vector.shape_cast %530 : vector<1x16x16xf32> to vector<16x16xf32>
    %532 = vector.broadcast %529 : f32 to vector<16x16xf32>
    %533 = arith.mulf %532, %531 : vector<16x16xf32>
    %534 = arith.addf %528, %533 : vector<16x16xf32>
    %c84 = arith.constant 84 : index
    %535 = memref.load %arg2[%c84] : memref<98xf32, #tpu.memory_space<smem>>
    %c1_291 = arith.constant 1 : index
    %c5_292 = arith.constant 5 : index
    %c0_293 = arith.constant 0 : index
    %536 = vector.load %arg4[%c1_291, %c5_292, %c0_293] : memref<2x22x22xf32, #tpu.memory_space<vmem>>, vector<1x16x16xf32>
    %537 = vector.shape_cast %536 : vector<1x16x16xf32> to vector<16x16xf32>
    %538 = vector.broadcast %535 : f32 to vector<16x16xf32>
    %539 = arith.mulf %538, %537 : vector<16x16xf32>
    %540 = arith.addf %534, %539 : vector<16x16xf32>
    %c85 = arith.constant 85 : index
    %541 = memref.load %arg2[%c85] : memref<98xf32, #tpu.memory_space<smem>>
    %c1_294 = arith.constant 1 : index
    %c5_295 = arith.constant 5 : index
    %c1_296 = arith.constant 1 : index
    %542 = vector.load %arg4[%c1_294, %c5_295, %c1_296] : memref<2x22x22xf32, #tpu.memory_space<vmem>>, vector<1x16x16xf32>
    %543 = vector.shape_cast %542 : vector<1x16x16xf32> to vector<16x16xf32>
    %544 = vector.broadcast %541 : f32 to vector<16x16xf32>
    %545 = arith.mulf %544, %543 : vector<16x16xf32>
    %546 = arith.addf %540, %545 : vector<16x16xf32>
    %c86 = arith.constant 86 : index
    %547 = memref.load %arg2[%c86] : memref<98xf32, #tpu.memory_space<smem>>
    %c1_297 = arith.constant 1 : index
    %c5_298 = arith.constant 5 : index
    %c2_299 = arith.constant 2 : index
    %548 = vector.load %arg4[%c1_297, %c5_298, %c2_299] : memref<2x22x22xf32, #tpu.memory_space<vmem>>, vector<1x16x16xf32>
    %549 = vector.shape_cast %548 : vector<1x16x16xf32> to vector<16x16xf32>
    %550 = vector.broadcast %547 : f32 to vector<16x16xf32>
    %551 = arith.mulf %550, %549 : vector<16x16xf32>
    %552 = arith.addf %546, %551 : vector<16x16xf32>
    %c87 = arith.constant 87 : index
    %553 = memref.load %arg2[%c87] : memref<98xf32, #tpu.memory_space<smem>>
    %c1_300 = arith.constant 1 : index
    %c5_301 = arith.constant 5 : index
    %c3_302 = arith.constant 3 : index
    %554 = vector.load %arg4[%c1_300, %c5_301, %c3_302] : memref<2x22x22xf32, #tpu.memory_space<vmem>>, vector<1x16x16xf32>
    %555 = vector.shape_cast %554 : vector<1x16x16xf32> to vector<16x16xf32>
    %556 = vector.broadcast %553 : f32 to vector<16x16xf32>
    %557 = arith.mulf %556, %555 : vector<16x16xf32>
    %558 = arith.addf %552, %557 : vector<16x16xf32>
    %c88 = arith.constant 88 : index
    %559 = memref.load %arg2[%c88] : memref<98xf32, #tpu.memory_space<smem>>
    %c1_303 = arith.constant 1 : index
    %c5_304 = arith.constant 5 : index
    %c4_305 = arith.constant 4 : index
    %560 = vector.load %arg4[%c1_303, %c5_304, %c4_305] : memref<2x22x22xf32, #tpu.memory_space<vmem>>, vector<1x16x16xf32>
    %561 = vector.shape_cast %560 : vector<1x16x16xf32> to vector<16x16xf32>
    %562 = vector.broadcast %559 : f32 to vector<16x16xf32>
    %563 = arith.mulf %562, %561 : vector<16x16xf32>
    %564 = arith.addf %558, %563 : vector<16x16xf32>
    %c89 = arith.constant 89 : index
    %565 = memref.load %arg2[%c89] : memref<98xf32, #tpu.memory_space<smem>>
    %c1_306 = arith.constant 1 : index
    %c5_307 = arith.constant 5 : index
    %c5_308 = arith.constant 5 : index
    %566 = vector.load %arg4[%c1_306, %c5_307, %c5_308] : memref<2x22x22xf32, #tpu.memory_space<vmem>>, vector<1x16x16xf32>
    %567 = vector.shape_cast %566 : vector<1x16x16xf32> to vector<16x16xf32>
    %568 = vector.broadcast %565 : f32 to vector<16x16xf32>
    %569 = arith.mulf %568, %567 : vector<16x16xf32>
    %570 = arith.addf %564, %569 : vector<16x16xf32>
    %c90 = arith.constant 90 : index
    %571 = memref.load %arg2[%c90] : memref<98xf32, #tpu.memory_space<smem>>
    %c1_309 = arith.constant 1 : index
    %c5_310 = arith.constant 5 : index
    %c6_311 = arith.constant 6 : index
    %572 = vector.load %arg4[%c1_309, %c5_310, %c6_311] : memref<2x22x22xf32, #tpu.memory_space<vmem>>, vector<1x16x16xf32>
    %573 = vector.shape_cast %572 : vector<1x16x16xf32> to vector<16x16xf32>
    %574 = vector.broadcast %571 : f32 to vector<16x16xf32>
    %575 = arith.mulf %574, %573 : vector<16x16xf32>
    %576 = arith.addf %570, %575 : vector<16x16xf32>
    %c91 = arith.constant 91 : index
    %577 = memref.load %arg2[%c91] : memref<98xf32, #tpu.memory_space<smem>>
    %c1_312 = arith.constant 1 : index
    %c6_313 = arith.constant 6 : index
    %c0_314 = arith.constant 0 : index
    %578 = vector.load %arg4[%c1_312, %c6_313, %c0_314] : memref<2x22x22xf32, #tpu.memory_space<vmem>>, vector<1x16x16xf32>
    %579 = vector.shape_cast %578 : vector<1x16x16xf32> to vector<16x16xf32>
    %580 = vector.broadcast %577 : f32 to vector<16x16xf32>
    %581 = arith.mulf %580, %579 : vector<16x16xf32>
    %582 = arith.addf %576, %581 : vector<16x16xf32>
    %c92 = arith.constant 92 : index
    %583 = memref.load %arg2[%c92] : memref<98xf32, #tpu.memory_space<smem>>
    %c1_315 = arith.constant 1 : index
    %c6_316 = arith.constant 6 : index
    %c1_317 = arith.constant 1 : index
    %584 = vector.load %arg4[%c1_315, %c6_316, %c1_317] : memref<2x22x22xf32, #tpu.memory_space<vmem>>, vector<1x16x16xf32>
    %585 = vector.shape_cast %584 : vector<1x16x16xf32> to vector<16x16xf32>
    %586 = vector.broadcast %583 : f32 to vector<16x16xf32>
    %587 = arith.mulf %586, %585 : vector<16x16xf32>
    %588 = arith.addf %582, %587 : vector<16x16xf32>
    %c93 = arith.constant 93 : index
    %589 = memref.load %arg2[%c93] : memref<98xf32, #tpu.memory_space<smem>>
    %c1_318 = arith.constant 1 : index
    %c6_319 = arith.constant 6 : index
    %c2_320 = arith.constant 2 : index
    %590 = vector.load %arg4[%c1_318, %c6_319, %c2_320] : memref<2x22x22xf32, #tpu.memory_space<vmem>>, vector<1x16x16xf32>
    %591 = vector.shape_cast %590 : vector<1x16x16xf32> to vector<16x16xf32>
    %592 = vector.broadcast %589 : f32 to vector<16x16xf32>
    %593 = arith.mulf %592, %591 : vector<16x16xf32>
    %594 = arith.addf %588, %593 : vector<16x16xf32>
    %c94 = arith.constant 94 : index
    %595 = memref.load %arg2[%c94] : memref<98xf32, #tpu.memory_space<smem>>
    %c1_321 = arith.constant 1 : index
    %c6_322 = arith.constant 6 : index
    %c3_323 = arith.constant 3 : index
    %596 = vector.load %arg4[%c1_321, %c6_322, %c3_323] : memref<2x22x22xf32, #tpu.memory_space<vmem>>, vector<1x16x16xf32>
    %597 = vector.shape_cast %596 : vector<1x16x16xf32> to vector<16x16xf32>
    %598 = vector.broadcast %595 : f32 to vector<16x16xf32>
    %599 = arith.mulf %598, %597 : vector<16x16xf32>
    %600 = arith.addf %594, %599 : vector<16x16xf32>
    %c95 = arith.constant 95 : index
    %601 = memref.load %arg2[%c95] : memref<98xf32, #tpu.memory_space<smem>>
    %c1_324 = arith.constant 1 : index
    %c6_325 = arith.constant 6 : index
    %c4_326 = arith.constant 4 : index
    %602 = vector.load %arg4[%c1_324, %c6_325, %c4_326] : memref<2x22x22xf32, #tpu.memory_space<vmem>>, vector<1x16x16xf32>
    %603 = vector.shape_cast %602 : vector<1x16x16xf32> to vector<16x16xf32>
    %604 = vector.broadcast %601 : f32 to vector<16x16xf32>
    %605 = arith.mulf %604, %603 : vector<16x16xf32>
    %606 = arith.addf %600, %605 : vector<16x16xf32>
    %c96 = arith.constant 96 : index
    %607 = memref.load %arg2[%c96] : memref<98xf32, #tpu.memory_space<smem>>
    %c1_327 = arith.constant 1 : index
    %c6_328 = arith.constant 6 : index
    %c5_329 = arith.constant 5 : index
    %608 = vector.load %arg4[%c1_327, %c6_328, %c5_329] : memref<2x22x22xf32, #tpu.memory_space<vmem>>, vector<1x16x16xf32>
    %609 = vector.shape_cast %608 : vector<1x16x16xf32> to vector<16x16xf32>
    %610 = vector.broadcast %607 : f32 to vector<16x16xf32>
    %611 = arith.mulf %610, %609 : vector<16x16xf32>
    %612 = arith.addf %606, %611 : vector<16x16xf32>
    %c97 = arith.constant 97 : index
    %613 = memref.load %arg2[%c97] : memref<98xf32, #tpu.memory_space<smem>>
    %c1_330 = arith.constant 1 : index
    %c6_331 = arith.constant 6 : index
    %c6_332 = arith.constant 6 : index
    %614 = vector.load %arg4[%c1_330, %c6_331, %c6_332] : memref<2x22x22xf32, #tpu.memory_space<vmem>>, vector<1x16x16xf32>
    %615 = vector.shape_cast %614 : vector<1x16x16xf32> to vector<16x16xf32>
    %616 = vector.broadcast %613 : f32 to vector<16x16xf32>
    %617 = arith.mulf %616, %615 : vector<16x16xf32>
    %618 = arith.addf %612, %617 : vector<16x16xf32>
    %cst_333 = arith.constant 0.000000e+00 : f32
    %619 = vector.broadcast %cst_333 : f32 to vector<16x16xf32>
    %620 = arith.subf %619, %618 : vector<16x16xf32>
    %621 = math.exp %620 : vector<16x16xf32>
    %cst_334 = arith.constant 1.000000e+00 : f32
    %622 = vector.broadcast %cst_334 : f32 to vector<16x16xf32>
    %623 = arith.addf %622, %621 : vector<16x16xf32>
    %cst_335 = arith.constant 1.000000e+00 : f32
    %624 = vector.broadcast %cst_335 : f32 to vector<16x16xf32>
    %625 = arith.divf %624, %623 : vector<16x16xf32>
    %c0_336 = arith.constant 0 : index
    %c0_337 = arith.constant 0 : index
    %c0_338 = arith.constant 0 : index
    %c0_339 = arith.constant 0 : index
    %626 = vector.load %arg3[%c0_336, %c0_337, %c0_338, %c0_339] : memref<1x1x16x16xf32, #tpu.memory_space<vmem>>, vector<1x1x16x16xf32>
    %627 = vector.shape_cast %626 : vector<1x1x16x16xf32> to vector<16x16xf32>
    %628 = vector.shape_cast %625 : vector<16x16xf32> to vector<1x1x16x16xf32>
    tpu.vector_store %arg3[%c0_336, %c0_337, %c0_338, %c0_339], %628 {strides = array<i32>} : memref<1x1x16x16xf32, #tpu.memory_space<vmem>>, vector<1x1x16x16xf32>,
    return
  }
  func.func @transform_0(%arg0: i32) -> (i32, i32, i32, i32) {
    %c0_i32 = arith.constant 0 : i32
    %c0_i32_0 = arith.constant 0 : i32
    %c0_i32_1 = arith.constant 0 : i32
    %c0_i32_2 = arith.constant 0 : i32
    return %arg0, %c0_i32, %c0_i32_0, %c0_i32_1 : i32, i32, i32, i32
  }
  func.func @transform_1(%arg0: i32) -> i32 {
    %c0_i32 = arith.constant 0 : i32
    %c0_i32_0 = arith.constant 0 : i32
    return %c0_i32 : i32
  }
  func.func @transform_2(%arg0: i32) -> (i32, i32, i32, i32) {
    %c0_i32 = arith.constant 0 : i32
    %c0_i32_0 = arith.constant 0 : i32
    %c0_i32_1 = arith.constant 0 : i32
    %c0_i32_2 = arith.constant 0 : i32
    return %arg0, %c0_i32, %c0_i32_0, %c0_i32_1 : i32, i32, i32, i32
  }
}

</mosaic_0001>

<bundles_post_ra>
// kernel: tpu_custom_call.1
= control target key start
LH: loop header
LB: loop body
LE: loop exit
PB: predicated region body
PF: predicated region fallthrough
CT: control target
= control target key end

     0   :  { %7 = vsyncpa [#allocation4], 0  ;;  %s2797_s0 = inlined_call_operand.hbm [shape: f32[2,4,16,16], index: 0, kind: input, shape index: {}]   ;;  %s2798_s1 = inlined_call_operand.vmem [shape: f32[98], index: 1, kind: input, shape index: {}]   ;;  %s2799_s2 = inlined_call_operand.hbm [shape: f32[2,1,16,16], index: 2, kind: output, shape index: {}]  }
   0x1   :  { %9 = vsyncpa [#allocation4 + $0x1], 0 }
   0x2   :  { %10 = vsyncpa [#allocation6], 0 }
   0x3   :  { %11 = vsyncpa [#allocation5], 0 }
   0x4   :  { %13 = vsyncpa [#allocation5 + $0x1], 0  ;;  %s1991_s9 = smov 0   ;;  %s1993_s10 = smov 0  }
   0x5   :  { %s1995_s11 = smov 0   ;;  %s1997_s12 = smov 0  }
   0x6 LB: > { %s2012_s13 = sadd.s32 4294967295, %s1959_s12   ;;  %s1646_s14 = sadd.s32 4294967294, %s1959_s12   ;;  %s1959_s12 = sphi %s1997_s12, %s2819_s12   ;;  %s1955_s11 = sphi %s1995_s11, %s2818_s11   ;;  %s1951_s10 = sphi %s1993_s10, %s2817_s10   ;;  %s1947_s9 = sphi %s1991_s9, %s2816_s9  }
   0x7   : > { %s2016_s15 = sadd.s32 1, %s1959_s12   ;;  %s26_s16 = sadd.s32 1, %s1955_s11 }
   0x8   : > { %s23_s17 = ssub.s32 %s1959_s12, %s2016_s15  ;;  %p33_p0 = scmp.ne.s32.totalorder %s1955_s11, %s1951_s10 }
   0x9   : > { %p24_p1 = scmp.eq.s32.totalorder %s23_s17, 0  ;;  %p34_p2 = scmp.eq.s32.totalorder %s1959_s12, 0 }
   0xa   : > { %p39_p3 = scmp.ne.s32.totalorder %s1951_s10, %s1947_s9  ;;  %p2801_p4 = scmp.eq.s32.totalorder %s2012_s13, 0 }
   0xb   : > { %s2028_s18 = scalar_select %p24_p1, %s1955_s11, %s26_s16  }
   0xc   : > { %p2030_p5 = por %p34_p2, %p33_p0  ;;  %p2036_p6 = por %p2801_p4, %p39_p3 }
   0xd   : > { %p84_p7 = scmp.eq.s32.totalorder %s2012_s13, 1  ;;  %p90_p8 = scmp.eq.s32.totalorder %s1646_s14, 1 }
   0xe   : > { %s2804_s20 = scalar_select %p2036_p6, 1, 0 }
   0xf   : > { %p1647_p9 = scmp.ge.s32.totalorder %s1959_s12, 1  ;;  %p97_p10 = scmp.lt.s32.totalorder %s1959_s12, 3 }
  0x10   : > { %p2043_p11 = por %p84_p7, %p33_p0  ;;  %p2047_p12 = por %p90_p8, %p39_p3 }
  0x11   : > { %p2051_p13 = pnand %p1647_p9, %p97_p10  ;;  %s110_s26 = sshll.u32 %s2798_s1, 4  ;;  %s111_s26 = int_to_ptr.vmem [resolvable:$true] %s110_s26 }
  0x12   : > { %s2805_s21 = scalar_select %p2043_p11, 1, 0 }
  0x13   : > { %s2806_s22 = scalar_select %p2047_p12, 1, 0 }
  0x14   : > { %p1775_p1 = pneg %p2051_p13  ;;  %p1788_p2 = scmp.lt.s32.totalorder %s1959_s12, 2 }
  0x15   : > { %s121_s28 = sand.u32 1, %s1955_s11   ;;  %s1844_s3 = scalar_lea.vmem %s111_s26, 16 }
  0x16   : > { %p2064_p7 = pnand %p1775_p1, %p2801_p4  ;;  %p2071_p3 = pnand %p1788_p2, %p2030_p5 }
  0x17   : > { %s1650_s30 = sshll.u32 %s121_s28, 6  ;;  %p1845_p8 = scmp.ne.s32.totalorder %s111_s26, %s1844_s3 }
  0x18   : > { %p1846_p9 = pneg %p2064_p7  ;;  %p1852_p12 = scmp.lt.s32.totalorder %s111_s26, %s111_s26 }
  0x19   : > { %p1853_p11 = scmp.lt.s32.totalorder %s1844_s3, %s1844_s3 }
  0x1a   : > { %p1847_p10 = pnand %p1846_p9, %p1845_p8 }
  0x1b   : > { %p1854_p1 = por %p1853_p11, %p1852_p12 }
  0x1c   : > { %p1848_p0 = pneg %p1847_p10 }
  0x1e   : > { %p1855_p4 = pnand %p1854_p1, %p1848_p0 }
  0x20   : > { %1858 = shalt.err (!%p1855_p4)
}
  0x21   : > { %s1961_s4 = smov [#allocation7]   ;;  %s1765_s5 = sshll.u32 %s1959_s12, 10 }
  0x22   : > { %1778 = dma.vmem_to_smem (!%p2064_p7), %s111_s26, 16, %s1961_s4, [#allocation6]  }
  0x23   : > { %s125_s6 = scalar_lea.vmem [#allocation3], %s1650_s30  ;;  %s2083_s16 = scalar_lea.hbm %s2797_s0, %s1765_s5 }
  0x24   : > { %s132_s7 = sshll.u32 %s125_s6, 4  ;;  %s2087_s17 = scalar_lea.sflag [#allocation4], %s121_s28  ;;  %s2085_s7 = int_to_ptr.vmem [resolvable:$true] %s132_s7 }
  0x25   : > { %s1859_s19 = scalar_lea.hbm %s2083_s16, 1024  ;;  %p1861_p5 = pneg %p2071_p3 }
  0x26   : > { %p1860_p4 = scmp.ne.s32.totalorder %s2083_s16, %s1859_s19  ;;  %s1864_s26 = scalar_lea.hbm %s2797_s0, 2048 }
  0x27   : > { %p1865_p0 = scmp.lt.u32.totalorder %s2083_s16, %s2797_s0  ;;  %p1866_p2 = scmp.lt.u32.totalorder %s1864_s26, %s1859_s19 }
  0x28   : > { %p1862_p11 = pnand %p1861_p5, %p1860_p4  ;;  %p1868_p8 = scmp.lt.u32.totalorder %s1859_s19, %s2083_s16 }
  0x29   : > { %p1867_p7 = por %p1866_p2, %p1865_p0 }
  0x2a   : > { %p1863_p12 = pneg %p1862_p11 }
  0x2b   : > { %p1869_p9 = por %p1868_p8, %p1867_p7 }
  0x2d   : > { %p1870_p10 = pnand %p1869_p9, %p1863_p12 }
  0x2f   : > { %1873 = shalt.err (!%p1870_p10)
}
  0x30   : > { %s1874_s28 = scalar_lea.vmem %s2085_s7, 1024  ;;  %s1962_s3 = smov [#allocation3]  }
  0x31   : > { %p1875_p1 = scmp.ne.s32.totalorder %s2085_s7, %s1874_s28  ;;  %s1879_s4 = sshll.u32 %s1962_s3, 4  ;;  %s1880_s4 = int_to_ptr.vmem [resolvable:$false] %s1879_s4 }
  0x32   : > { %s1881_s5 = scalar_lea.vmem %s1880_s4, 2048  ;;  %p1882_p6 = scmp.lt.s32.totalorder %s2085_s7, %s1880_s4 }
  0x33   : > { %p1877_p4 = pnand %p1875_p1, %p1861_p5  ;;  %p1883_p0 = scmp.lt.s32.totalorder %s1881_s5, %s1874_s28 }
  0x35   : > { %p1878_p11 = pneg %p1877_p4  ;;  %p1884_p2 = por %p1883_p0, %p1882_p6 }
  0x37   : > { %p1885_p7 = pnand %p1884_p2, %p1878_p11 }
  0x39   : > { %1888 = shalt.err (!%p1885_p7)
}
  0x3a   : > { %s1963_s6 = smov 128   ;;  %s1964_s8 = smov 8  }
  0x3b   : > { %1782 = dma.hbm_to_vmem [thread:$0]  (!%p2071_p3), %s2083_s16, 1024, %s2085_s7, %s2087_s17, %s1963_s6, %s1963_s6, %s1964_s8  }
  0x3c   : > { %144 = sbr.rel (%p2051_p13) target bundleno = 704 (0x2c0), region = 28  ;;  %s2118_s14 = sand.u32 (!%p2051_p13), 1, %s1951_s10  }
  0x3d   : > { %s1654_s19 = sshll.u32 (!%p2051_p13), %s2118_s14, 6  ;;  %s147_s24 = scalar_lea.sflag (!%p2051_p13), [#allocation4], %s2118_s14 }
  0x3e   : > { %s150_s25 = scalar_lea.vmem (!%p2051_p13), [#allocation3], %s1654_s19  ;;  %p2810_p6 = scmp.ne.s32.totalorder (!%p2051_p13), %s2804_s20, 0 }
  0x43   : > { %1934 = dma.done.wait (%p2810_p6), %s147_s24, 1024  }
  0x44   : > { %1936 = vsyncadd (%p2810_p6), %s147_s24, 4294966272  ;;  %p2811_p5 = scmp.eq.s32.totalorder %s2012_s13, 0 }
  0x46   : > { %1938 = dma.done.wait (%p2811_p5), [#allocation6], 16   ;;  %p2812_p3 = pmov %p2811_p5 }
  0x48   : > { %1940 = vsyncadd (%p2812_p3), [#allocation6], 4294967280 }
  0x49   : > { %159 = sfence }
  0x4a   : > { %v176_v0 = vld [vmem:[%s150_s25] sm:$0xff]  ;;  %v1657_v1 = vld [vmem:[%s150_s25 + $0x10] sm:$0xff]  ;;  %vm201_vm0 = vcmask 174080   ;;  %v177_v4 = vld [vmem:[%s150_s25 + $0x8] sm:$0xff]  ;;  %v1965_v6 = vmov 0.0   ;;  %vm206_vm1 = vcmask 23552  }
  0x4b   : > { %v1659_v2 = vld [vmem:[%s150_s25 + $0x20] sm:$0xff]  ;;  %v181_v3 = vadd.f32 %v1657_v1, %v176_v0  ;;  %v1658_v5 = vld [vmem:[%s150_s25 + $0x18] sm:$0xff]  ;;  %202 = vst.msk [vmem:[#allocation2] sm:$0x7] %vm201_vm0, %v1965_v6  ;;  %vm214_vm2 = vcmask 179352   ;;  %v1661_v7 = vld [vmem:[%s150_s25 + $0x30] sm:$0xff]  ;;  %v183_v10 = vmax.f32 %v176_v0, %v1657_v1 }
  0x4c   : > { %203 = vst.msk [vmem:[#allocation2 + $0x18] sm:$0x7] %vm201_vm0, %v1965_v6  ;;  %204 = vst.msk [vmem:[#allocation2 + $0x13] sm:$0x7] %vm201_vm0, %v1965_v6  ;;  %v182_v8 = vadd.f32 %v1658_v5, %v177_v4  ;;  %v1660_v9 = vld [vmem:[%s150_s25 + $0x28] sm:$0xff]  ;;  %v184_v11 = vmax.f32 %v177_v4, %v1658_v5  ;;  %v1662_v13 = vld [vmem:[%s150_s25 + $0x38] sm:$0xff] }
  0x4d   : > { %205 = vst.msk [vmem:[#allocation2 + $0x2b] sm:$0x7] %vm201_vm0, %v1965_v6  ;;  %v188_v12 = vadd.f32 %v1659_v2, %v181_v3  ;;  %vm209_vm3 = vcmask 21504   ;;  %vm217_vm4 = vcmask 177304   ;;  %v190_v15 = vmax.f32 %v183_v10, %v1659_v2  ;;  %s1966_s20 = smov 3   ;;  %s1663_s23 = sld [smem:[#allocation7 + $0x1]] }
  0x4e   : > { %207 = vst.msk [vmem:[#allocation2] sm:$0xff] %vm206_vm1, %v1965_v6  ;;  %208 = vst.msk [vmem:[#allocation2 + $0x8] sm:$0xff] %vm206_vm1, %v1965_v6  ;;  %v189_v14 = vadd.f32 %v1660_v9, %v182_v8  ;;  %v191_v16 = vmax.f32 %v184_v11, %v1660_v9  ;;  %vm230_vm5 = vcmask 154648   ;;  %s1664_s29 = sld [smem:[#allocation7 + $0x2]]  ;;  %s1665_s7 = sld [smem:[#allocation7 + $0x3]]  ;;  %vm1544_vm6 = vcmask 130048  }
  0x4f   : > { %212 = vst.msk [vmem:[#allocation2 + $0x20] sm:$0xff] %vm206_vm1, %v1965_v6  ;;  %211 = vst.msk [vmem:[#allocation2 + $0x18] sm:$0xff] %vm206_vm1, %v1965_v6  ;;  %v195_v17 = vadd.f32 %v1661_v7, %v188_v12  ;;  %v197_v19 = vmax.f32 %v190_v15, %v1661_v7  ;;  %s1666_s16 = sld [smem:[#allocation7 + $0x4]]  ;;  %s1967_s17 = smov 127  }
  0x50   : > { %215 = vst.msk [vmem:[#allocation2] sm:$0xff] %vm214_vm2, %v1965_v6  ;;  %216 = vst.msk [vmem:[#allocation2 + $0x8] sm:$0xff] %vm214_vm2, %v1965_v6  ;;  %v196_v18 = vadd.f32 %v1662_v13, %v189_v14  ;;  %v198_v21 = vmax.f32 %v191_v16, %v1662_v13  ;;  %s1667_s26 = sld [smem:[#allocation7 + $0x5]]  ;;  %s1968_s27 = smov 126  }
  0x51   : > { %220 = vst.msk [vmem:[#allocation2 + $0x20] sm:$0xff] %vm214_vm2, %v1965_v6  ;;  %219 = vst.msk [vmem:[#allocation2 + $0x18] sm:$0xff] %vm214_vm2, %v1965_v6  ;;  %v199_v20 = vmul.f32 0.25, %v195_v17  ;;  %235 = vrot.lane.b32.xlu1 %v197_v19, %s1966_s20  ;;  %s1668_s30 = sld [smem:[#allocation7 + $0x6]]  ;;  %s1969_s28 = smov 125  }
  0x52   : > { %210 = vst.msk [vmem:[#allocation2 + $0x10] sm:$0x3f] %vm209_vm3, %v1965_v6  ;;  %213 = vst.msk [vmem:[#allocation2 + $0x28] sm:$0x3f] %vm209_vm3, %v1965_v6  ;;  %v200_v22 = vmul.f32 0.25, %v196_v18  ;;  %s1670_s3 = sld [smem:[#allocation7 + $0x8]] }
  0x53   : > { %218 = vst.msk [vmem:[#allocation2 + $0x10] sm:$0x3f] %vm217_vm4, %v1965_v6  ;;  %221 = vst.msk [vmem:[#allocation2 + $0x28] sm:$0x3f] %vm217_vm4, %v1965_v6  ;;  %224 = vrot.lane.b32.xlu0 %v199_v20, %s1966_s20  ;;  %v253_v27 = vstv %s1663_s23  ;;  %s1970_s4 = smov 124   ;;  %s1671_s5 = sld [smem:[#allocation7 + $0x9]] }
  0x54   : > { %v267_v30 = vstv %s1664_s29  ;;  %v281_v34 = vstv %s1665_s7  ;;  %s1971_s6 = smov 123   ;;  %s1672_s8 = sld [smem:[#allocation7 + $0xa]] }
  0x55   : > { %237 = vrot.lane.b32.xlu1 %v198_v21, %s1966_s20  ;;  %v295_v37 = vstv %s1666_s16  ;;  %s1972_s19 = smov 122   ;;  %s1673_s24 = sld [smem:[#allocation7 + $0xb]] }
  0x56   : > { %v309_v40 = vstv %s1667_s26  ;;  %s1674_s25 = sld [smem:[#allocation7 + $0xc]]  ;;  %s1677_s23 = sld [smem:[#allocation7 + $0xf]] }
  0x57   : > { %226 = vrot.lane.b32.xlu0 %v200_v22, %s1966_s20  ;;  %v323_v43 = vstv %s1668_s30  ;;  %s1675_s20 = sld [smem:[#allocation7 + $0xd]]  ;;  %s1678_s29 = sld [smem:[#allocation7 + $0x10]] }
  0x58   : > { %v345_v47 = vstv %s1670_s3  ;;  %s1679_s7 = sld [smem:[#allocation7 + $0x11]]  ;;  %s1680_s16 = sld [smem:[#allocation7 + $0x12]] }
  0x59   : > { %v359_v51 = vstv %s1671_s5  ;;  %s1681_s26 = sld [smem:[#allocation7 + $0x13]]  ;;  %s1682_s30 = sld [smem:[#allocation7 + $0x14]] }
  0x5a   : > { %v373_v54 = vstv %s1672_s8  ;;  %s1684_s3 = sld [smem:[#allocation7 + $0x16]]  ;;  %s1685_s5 = sld [smem:[#allocation7 + $0x17]] }
  0x5b   : > { %v387_v57 = vstv %s1673_s24  ;;  %s1686_s8 = sld [smem:[#allocation7 + $0x18]]  ;;  %s1687_s24 = sld [smem:[#allocation7 + $0x19]] }
  0x5c   : > { %v401_v60 = vstv %s1674_s25  ;;  %v437_v3 = vstv %s1677_s23  ;;  %s1688_s25 = sld [smem:[#allocation7 + $0x1a]]  ;;  %s1691_s23 = sld [smem:[#allocation7 + $0x1d]] }
  0x5d   : > { %v415_v63 = vstv %s1675_s20  ;;  %v451_v7 = vstv %s1678_s29  ;;  %s1689_s20 = sld [smem:[#allocation7 + $0x1b]]  ;;  %s1692_s29 = sld [smem:[#allocation7 + $0x1e]] }
  0x5e   : > { %v465_v10 = vstv %s1679_s7  ;;  %v479_v13 = vstv %s1680_s16  ;;  %s1693_s7 = sld [smem:[#allocation7 + $0x1f]]  ;;  %s1694_s16 = sld [smem:[#allocation7 + $0x20]] }
  0x5f   : > { %v493_v16 = vstv %s1681_s26  ;;  %v507_v19 = vstv %s1682_s30  ;;  %s1695_s26 = sld [smem:[#allocation7 + $0x21]]  ;;  %s1696_s30 = sld [smem:[#allocation7 + $0x22]] }
  0x60   : > { %p2813_p12 = scmp.ne.s32.totalorder %s2805_s21, 0 }
  0xc3   : > { %v236_v23 = vpop.permute.xlu1 %235 }
  0xc4   : > { %242 = vst.msk [vmem:[#allocation2 + $0x1b] sm:$0xff] %vm230_vm5, %v236_v23  ;;  %v529_v23 = vstv %s1684_s3  ;;  %s2262_s3 = sld [smem:[#allocation7 + $0x24]] }
  0xc5   : > { %v225_v24 = vpop.permute.xlu0 %224 }
  0xc6   : > { %231 = vst.msk [vmem:[#allocation2 + $0x3] sm:$0xff] %vm230_vm5, %v225_v24 }
  0xc7   : > { %v238_v25 = vpop.permute.xlu1 %237 }
  0xc8   : > { %243 = vst.msk [vmem:[#allocation2 + $0x23] sm:$0xff] %vm230_vm5, %v238_v25 }
  0xc9   : > { %v227_v26 = vpop.permute.xlu0 %226 }
  0xca   : > { %232 = vst.msk [vmem:[#allocation2 + $0xb] sm:$0xff] %vm230_vm5, %v227_v26 }
  0xcd   : > { %v2134_v28 = vld [vmem:[#allocation2] sm:$0xff] }
  0xce   : > { %v254_v29 = vmul.f32 %v253_v27, %v2134_v28  ;;  %v268_v32 = vmul.f32 %v267_v30, %v2134_v28  ;;  %v282_v35 = vmul.f32 %v281_v34, %v2134_v28  ;;  %v296_v38 = vmul.f32 %v295_v37, %v2134_v28  ;;  %v2158_v46 = vld [vmem:[#allocation2 + $0x1] sm:$0xff] }
  0xcf   : > { %v310_v41 = vmul.f32 %v309_v40, %v2134_v28  ;;  %v324_v44 = vmul.f32 %v323_v43, %v2134_v28  ;;  %v346_v48 = vmul.f32 %v345_v47, %v2158_v46  ;;  %v360_v52 = vmul.f32 %v359_v51, %v2158_v46  ;;  %v2186_v2 = vld [vmem:[#allocation2 + $0x2] sm:$0xff] }
  0xd0   : > { %258 = vrot.lane.b32.xlu0 %v254_v29, %s1967_s17  ;;  %v374_v55 = vmul.f32 %v373_v54, %v2158_v46  ;;  %v388_v58 = vmul.f32 %v387_v57, %v2158_v46  ;;  %v402_v61 = vmul.f32 %v401_v60, %v2158_v46  ;;  %v416_v0 = vmul.f32 %v415_v63, %v2158_v46  ;;  %v2214_v22 = vld [vmem:[#allocation2 + $0x3] sm:$0xff] }
  0xd1   : > { %v2138_v31 = vld [vmem:[#allocation2 + $0x8] sm:$0xff]  ;;  %v438_v4 = vmul.f32 %v437_v3, %v2186_v2  ;;  %v452_v8 = vmul.f32 %v451_v7, %v2186_v2  ;;  %v466_v11 = vmul.f32 %v465_v10, %v2186_v2  ;;  %v480_v14 = vmul.f32 %v479_v13, %v2186_v2 }
  0xd2   : > { %v255_v33 = vmul.f32 %v253_v27, %v2138_v31  ;;  %v269_v36 = vmul.f32 %v267_v30, %v2138_v31  ;;  %v283_v39 = vmul.f32 %v281_v34, %v2138_v31  ;;  %v297_v42 = vmul.f32 %v295_v37, %v2138_v31  ;;  %v2164_v50 = vld [vmem:[#allocation2 + $0x9] sm:$0xff] }
  0xd3   : > { %v311_v45 = vmul.f32 %v309_v40, %v2138_v31  ;;  %v325_v49 = vmul.f32 %v323_v43, %v2138_v31  ;;  %v347_v53 = vmul.f32 %v345_v47, %v2164_v50  ;;  %v361_v56 = vmul.f32 %v359_v51, %v2164_v50  ;;  %v2192_v6 = vld [vmem:[#allocation2 + $0xa] sm:$0xff] }
  0xd4   : > { %272 = vrot.lane.b32.xlu0 %v268_v32, %s1968_s27  ;;  %260 = vrot.lane.b32.xlu1 %v255_v33, %s1967_s17  ;;  %v375_v59 = vmul.f32 %v373_v54, %v2164_v50  ;;  %v389_v62 = vmul.f32 %v387_v57, %v2164_v50  ;;  %v403_v1 = vmul.f32 %v401_v60, %v2164_v50  ;;  %v2220_v26 = vld [vmem:[#allocation2 + $0xb] sm:$0xff]  ;;  %v543_v27 = vstv %s1685_s5  ;;  %s2268_s5 = sld [smem:[#allocation7 + $0x25]] }
  0xd5   : > { %v417_v5 = vmul.f32 %v415_v63, %v2164_v50  ;;  %v439_v9 = vmul.f32 %v437_v3, %v2192_v6  ;;  %v453_v12 = vmul.f32 %v451_v7, %v2192_v6  ;;  %v467_v15 = vmul.f32 %v465_v10, %v2192_v6 }
  0xd6   : > { %v494_v17 = vmul.f32 %v493_v16, %v2186_v2  ;;  %v481_v18 = vmul.f32 %v479_v13, %v2192_v6  ;;  %v508_v20 = vmul.f32 %v507_v19, %v2186_v2  ;;  %v495_v21 = vmul.f32 %v493_v16, %v2192_v6 }
  0xd7   : > { %v530_v24 = vmul.f32 %v529_v23, %v2214_v22  ;;  %v509_v25 = vmul.f32 %v507_v19, %v2192_v6  ;;  %v544_v29 = vmul.f32 %v543_v27, %v2214_v22  ;;  %v531_v30 = vmul.f32 %v529_v23, %v2220_v26 }
  0xd8   : > { %286 = vrot.lane.b32.xlu0 %v282_v35, %s1969_s28  ;;  %274 = vrot.lane.b32.xlu1 %v269_v36, %s1968_s27  ;;  %v557_v32 = vstv %s1686_s8  ;;  %v545_v34 = vmul.f32 %v543_v27, %v2220_v26  ;;  %v571_v35 = vstv %s1687_s24  ;;  %s2270_s8 = sld [smem:[#allocation7]]  ;;  %s2279_s24 = sld [smem:[#allocation7 + $0x26]] }
  0xd9   : > { %v558_v33 = vmul.f32 %v557_v32, %v2214_v22  ;;  %v572_v36 = vmul.f32 %v571_v35, %v2214_v22  ;;  %v559_v37 = vmul.f32 %v557_v32, %v2220_v26  ;;  %v573_v40 = vmul.f32 %v571_v35, %v2220_v26 }
  0xda   : > { %v635_v51 = vstv %s1692_s29  ;;  %v649_v54 = vstv %s1693_s7  ;;  %v663_v57 = vstv %s1694_s16  ;;  %v677_v60 = vstv %s1695_s26  ;;  %s2307_s29 = sld [smem:[#allocation7 + $0x29]]  ;;  %s2314_s7 = sld [smem:[#allocation7 + $0x2b]] }
  0xdb   : > { %v691_v63 = vstv %s1696_s30  ;;  %s2323_s16 = sld [smem:[#allocation7 + $0x2c]]  ;;  %s2333_s26 = sld [smem:[#allocation7 + $0x2d]] }
  0xdc   : > { %300 = vrot.lane.b32.xlu0 %v296_v38, %s1970_s4  ;;  %288 = vrot.lane.b32.xlu1 %v283_v39, %s1969_s28  ;;  %v585_v38 = vstv %s1688_s25  ;;  %s2288_s25 = sld [smem:[#allocation7 + $0x27]]  ;;  %s2342_s30 = sld [smem:[#allocation7 + $0x2e]] }
  0xdd   : > { %v586_v39 = vmul.f32 %v585_v38, %v2214_v22  ;;  %v587_v43 = vmul.f32 %v585_v38, %v2220_v26 }
  0xde   : > { %v247_v13 = vstv %s2270_s8  ;;  %v741_v19 = vstv %s2279_s24  ;;  %s2358_s8 = sld [smem:[#allocation7 + $0x30]]  ;;  %s2365_s24 = sld [smem:[#allocation7 + $0x32]] }
  0xdf   : > { %v249_v27 = vmul.f32 %v247_v13, %v2138_v31 }
  0xe0   : > { %314 = vrot.lane.b32.xlu0 %v310_v41, %s1971_s6  ;;  %302 = vrot.lane.b32.xlu1 %v297_v42, %s1970_s4  ;;  %v599_v41 = vstv %s1689_s20  ;;  %s2297_s20 = sld [smem:[#allocation7 + $0x28]] }
  0xe1   : > { %v600_v42 = vmul.f32 %v599_v41, %v2214_v22 }
  0xe4   : > { %328 = vrot.lane.b32.xlu0 %v324_v44, %s1972_s19  ;;  %316 = vrot.lane.b32.xlu1 %v311_v45, %s1971_s6  ;;  %v2242_v44 = vld [vmem:[#allocation2 + $0x4] sm:$0xff]  ;;  %v621_v45 = vstv %s1691_s23  ;;  %s2299_s23 = sld [smem:[#allocation7 + $0x7]] }
  0xe5   : > { %v622_v47 = vmul.f32 %v621_v45, %v2242_v44 }
  0xe6   : > { %v769_v38 = vstv %s2297_s20  ;;  %s2384_s20 = sld [smem:[#allocation7 + $0x34]] }
  0xe8   : > { %350 = vrot.lane.b32.xlu0 %v346_v48, %s1967_s17  ;;  %330 = vrot.lane.b32.xlu1 %v325_v49, %s1972_s19  ;;  %v601_v48 = vmul.f32 %v599_v41, %v2220_v26  ;;  %v2248_v49 = vld [vmem:[#allocation2 + $0xc] sm:$0xff] }
  0xe9   : > { %v679_v3 = vmul.f32 %v677_v60, %v2248_v49  ;;  %v693_v10 = vmul.f32 %v691_v63, %v2248_v49 }
  0xec   : > { %364 = vrot.lane.b32.xlu0 %v360_v52, %s1968_s27  ;;  %352 = vrot.lane.b32.xlu1 %v347_v53, %s1967_s17  ;;  %v636_v52 = vmul.f32 %v635_v51, %v2242_v44  ;;  %v623_v53 = vmul.f32 %v621_v45, %v2248_v49 }
  0xf0   : > { %378 = vrot.lane.b32.xlu0 %v374_v55, %s1969_s28  ;;  %366 = vrot.lane.b32.xlu1 %v361_v56, %s1968_s27  ;;  %v650_v55 = vmul.f32 %v649_v54, %v2242_v44  ;;  %v637_v56 = vmul.f32 %v635_v51, %v2248_v49 }
  0xf4   : > { %392 = vrot.lane.b32.xlu0 %v388_v58, %s1970_s4  ;;  %380 = vrot.lane.b32.xlu1 %v375_v59, %s1969_s28  ;;  %v664_v58 = vmul.f32 %v663_v57, %v2242_v44  ;;  %v651_v59 = vmul.f32 %v649_v54, %v2248_v49 }
  0xf8   : > { %406 = vrot.lane.b32.xlu0 %v402_v61, %s1971_s6  ;;  %394 = vrot.lane.b32.xlu1 %v389_v62, %s1970_s4  ;;  %v678_v61 = vmul.f32 %v677_v60, %v2242_v44  ;;  %v665_v62 = vmul.f32 %v663_v57, %v2248_v49  ;;  %v2330_v60 = vld [vmem:[#allocation2 + $0x6] sm:$0xff] }
  0xfc   : > { %420 = vrot.lane.b32.xlu0 %v416_v0, %s1972_s19  ;;  %408 = vrot.lane.b32.xlu1 %v403_v1, %s1971_s6  ;;  %v692_v1 = vmul.f32 %v691_v63, %v2242_v44 }
 0x100   : > { %442 = vrot.lane.b32.xlu0 %v438_v4, %s1967_s17  ;;  %422 = vrot.lane.b32.xlu1 %v417_v5, %s1972_s19  ;;  %v2276_v4 = vld [vmem:[#allocation2 + $0x5] sm:$0xff]  ;;  %v713_v5 = vstv %s2262_s3  ;;  %s2349_s3 = sld [smem:[#allocation7 + $0x2f]] }
 0x101   : > { %v770_v45 = vmul.f32 %v769_v38, %v2276_v4 }
 0x104   : > { %456 = vrot.lane.b32.xlu0 %v452_v8, %s1968_s27  ;;  %444 = vrot.lane.b32.xlu1 %v439_v9, %s1967_s17  ;;  %v714_v9 = vmul.f32 %v713_v5, %v2276_v4 }
 0x108   : > { %470 = vrot.lane.b32.xlu0 %v466_v11, %s1969_s28  ;;  %458 = vrot.lane.b32.xlu1 %v453_v12, %s1968_s27  ;;  %v2285_v11 = vld [vmem:[#allocation2 + $0xd] sm:$0xff]  ;;  %v727_v12 = vstv %s2268_s5  ;;  %s2351_s5 = sld [smem:[#allocation7 + $0xe]] }
 0x109   : > { %v728_v16 = vmul.f32 %v727_v12, %v2276_v4 }
 0x10c   : > { %484 = vrot.lane.b32.xlu0 %v480_v14, %s1970_s4  ;;  %472 = vrot.lane.b32.xlu1 %v467_v15, %s1969_s28 }
 0x110   : > { %498 = vrot.lane.b32.xlu0 %v494_v17, %s1971_s6  ;;  %486 = vrot.lane.b32.xlu1 %v481_v18, %s1970_s4  ;;  %v715_v17 = vmul.f32 %v713_v5, %v2285_v11  ;;  %v248_v18 = vmul.f32 %v247_v13, %v2134_v28  ;;  %v833_v13 = vstv %s2333_s26  ;;  %s2416_s26 = sld [smem:[#allocation7 + $0x39]] }
 0x114   : > { %512 = vrot.lane.b32.xlu0 %v508_v20, %s1972_s19  ;;  %500 = vrot.lane.b32.xlu1 %v495_v21, %s1971_s6 }
 0x118   : > { %534 = vrot.lane.b32.xlu0 %v530_v24, %s1967_s17  ;;  %514 = vrot.lane.b32.xlu1 %v509_v25, %s1972_s19  ;;  %v742_v24 = vmul.f32 %v741_v19, %v2276_v4  ;;  %v729_v25 = vmul.f32 %v727_v12, %v2285_v11 }
 0x11c   : > { %548 = vrot.lane.b32.xlu0 %v544_v29, %s1968_s27  ;;  %536 = vrot.lane.b32.xlu1 %v531_v30, %s1967_s17  ;;  %v755_v29 = vstv %s2288_s25  ;;  %s2374_s25 = sld [smem:[#allocation7 + $0x33]] }
 0x11d   : > { %v756_v35 = vmul.f32 %v755_v29, %v2276_v4 }
 0x120   : > { %562 = vrot.lane.b32.xlu0 %v558_v33, %s1969_s28  ;;  %550 = vrot.lane.b32.xlu1 %v545_v34, %s1968_s27 }
 0x124   : > { %576 = vrot.lane.b32.xlu0 %v572_v36, %s1970_s4  ;;  %564 = vrot.lane.b32.xlu1 %v559_v37, %s1969_s28  ;;  %v743_v36 = vmul.f32 %v741_v19, %v2285_v11 }
 0x128   : > { %590 = vrot.lane.b32.xlu0 %v586_v39, %s1971_s6  ;;  %578 = vrot.lane.b32.xlu1 %v573_v40, %s1970_s4  ;;  %v339_v39 = vstv %s2299_s23  ;;  %s2393_s23 = sld [smem:[#allocation7 + $0x35]] }
 0x12c   : > { %604 = vrot.lane.b32.xlu0 %v600_v42, %s1972_s19  ;;  %592 = vrot.lane.b32.xlu1 %v587_v43, %s1971_s6 }
 0x130   : > { %626 = vrot.lane.b32.xlu0 %v622_v47, %s1967_s17  ;;  %606 = vrot.lane.b32.xlu1 %v601_v48, %s1972_s19  ;;  %v757_v47 = vmul.f32 %v755_v29, %v2285_v11  ;;  %v340_v48 = vmul.f32 %v339_v39, %v2158_v46  ;;  %v341_v46 = vmul.f32 %v339_v39, %v2164_v50  ;;  %v819_v50 = vstv %s2323_s16  ;;  %s2409_s16 = sld [smem:[#allocation7 + $0x37]] }
 0x134   : > { %640 = vrot.lane.b32.xlu0 %v636_v52, %s1968_s27  ;;  %628 = vrot.lane.b32.xlu1 %v623_v53, %s1967_s17  ;;  %v783_v53 = vstv %s2307_s29  ;;  %s2400_s29 = sld [smem:[#allocation7 + $0x36]] }
 0x135   : > { %v785_v5 = vmul.f32 %v783_v53, %v2285_v11 }
 0x138   : > { %654 = vrot.lane.b32.xlu0 %v650_v55, %s1969_s28  ;;  %642 = vrot.lane.b32.xlu1 %v637_v56, %s1968_s27 }
 0x13c   : > { %668 = vrot.lane.b32.xlu0 %v664_v58, %s1970_s4  ;;  %656 = vrot.lane.b32.xlu1 %v651_v59, %s1969_s28  ;;  %v784_v58 = vmul.f32 %v783_v53, %v2276_v4  ;;  %v771_v59 = vmul.f32 %v769_v38, %v2285_v11 }
 0x140   : > { %682 = vrot.lane.b32.xlu0 %v678_v61, %s1971_s6  ;;  %670 = vrot.lane.b32.xlu1 %v665_v62, %s1970_s4  ;;  %v805_v62 = vstv %s2314_s7  ;;  %s2402_s7 = sld [smem:[#allocation7 + $0x15]] }
 0x142   : > { %v259_v0 = vpop.permute.xlu0 %258 }
 0x143   : > { %v264_v20 = vadd.f32 %v259_v0, %v248_v18 }
 0x144   : > { %696 = vrot.lane.b32.xlu0 %v692_v1, %s1972_s19  ;;  %684 = vrot.lane.b32.xlu1 %v679_v3, %s1971_s6  ;;  %v806_v3 = vmul.f32 %v805_v62, %v2330_v60 }
 0x146   : > { %v261_v7 = vpop.permute.xlu1 %260  ;;  %v273_v8 = vpop.permute.xlu0 %272 }
 0x147   : > { %v278_v28 = vadd.f32 %v273_v8, %v264_v20  ;;  %v265_v30 = vadd.f32 %v261_v7, %v249_v27  ;;  %v2339_v7 = vld [vmem:[#allocation2 + $0xe] sm:$0xff]  ;;  %v847_v20 = vstv %s2342_s30  ;;  %s2425_s30 = sld [smem:[#allocation7 + $0x3a]] }
 0x148   : > { %718 = vrot.lane.b32.xlu0 %v714_v9, %s1967_s17  ;;  %698 = vrot.lane.b32.xlu1 %v693_v10, %s1972_s19  ;;  %v820_v10 = vmul.f32 %v819_v50, %v2330_v60  ;;  %v807_v12 = vmul.f32 %v805_v62, %v2339_v7  ;;  %v821_v18 = vmul.f32 %v819_v50, %v2339_v7 }
 0x149   : > { %v848_v27 = vmul.f32 %v847_v20, %v2330_v60  ;;  %v849_v38 = vmul.f32 %v847_v20, %v2339_v7 }
 0x14a   : > { %v275_v14 = vpop.permute.xlu1 %274  ;;  %v287_v15 = vpop.permute.xlu0 %286 }
 0x14b   : > { %v292_v32 = vadd.f32 %v287_v15, %v278_v28  ;;  %v279_v37 = vadd.f32 %v275_v14, %v265_v30  ;;  %v835_v28 = vmul.f32 %v833_v13, %v2339_v7 }
 0x14c   : > { %732 = vrot.lane.b32.xlu0 %v728_v16, %s1968_s27  ;;  %720 = vrot.lane.b32.xlu1 %v715_v17, %s1967_s17  ;;  %v834_v17 = vmul.f32 %v833_v13, %v2330_v60  ;;  %v939_v13 = vstv %s2393_s23  ;;  %s2476_s23 = sld [smem:[#allocation7 + $0x41]] }
 0x14e   : > { %v289_v21 = vpop.permute.xlu1 %288  ;;  %v301_v23 = vpop.permute.xlu0 %300 }
 0x14f   : > { %v306_v31 = vadd.f32 %v301_v23, %v292_v32  ;;  %v293_v40 = vadd.f32 %v289_v21, %v279_v37  ;;  %v861_v32 = vstv %s2349_s3  ;;  %s2435_s3 = sld [smem:[#allocation7 + $0x3b]] }
 0x150   : > { %746 = vrot.lane.b32.xlu0 %v742_v24, %s1969_s28  ;;  %734 = vrot.lane.b32.xlu1 %v729_v25, %s1968_s27 }
 0x152   : > { %v303_v33 = vpop.permute.xlu1 %302  ;;  %v315_v34 = vpop.permute.xlu0 %314 }
 0x153   : > { %v320_v41 = vadd.f32 %v315_v34, %v306_v31  ;;  %v307_v51 = vadd.f32 %v303_v33, %v293_v40  ;;  %v431_v33 = vstv %s2351_s5  ;;  %v862_v31 = vmul.f32 %v861_v32, %v2330_v60  ;;  %s2444_s5 = sld [smem:[#allocation7 + $0x3c]] }
 0x154   : > { %760 = vrot.lane.b32.xlu0 %v756_v35, %s1970_s4  ;;  %748 = vrot.lane.b32.xlu1 %v743_v36, %s1969_s28  ;;  %v432_v39 = vmul.f32 %v431_v33, %v2186_v2  ;;  %v433_v2 = vmul.f32 %v431_v33, %v2192_v6  ;;  %v2391_v6 = vld [vmem:[#allocation2 + $0x20] sm:$0xff] }
 0x156   : > { %v317_v42 = vpop.permute.xlu1 %316  ;;  %v329_v43 = vpop.permute.xlu0 %328 }
 0x157   : > { %v334_v52 = vadd.f32 %v329_v43, %v320_v41  ;;  %v321_v54 = vadd.f32 %v317_v42, %v307_v51  ;;  %v875_v42 = vstv %s2358_s8  ;;  %s2451_s8 = sld [smem:[#allocation7 + $0x3d]] }
 0x158   : > { %774 = vrot.lane.b32.xlu0 %v770_v45, %s1971_s6  ;;  %762 = vrot.lane.b32.xlu1 %v757_v47, %s1970_s4  ;;  %v876_v51 = vmul.f32 %v875_v42, %v2330_v60 }
 0x159   : > { %v342_v55 = vadd.f32 %v340_v48, %v334_v52  ;;  %v863_v52 = vmul.f32 %v861_v32, %v2339_v7  ;;  %v941_v32 = vmul.f32 %v939_v13, %v2391_v6 }
 0x15a   : > { %v331_v56 = vpop.permute.xlu1 %330  ;;  %v351_v57 = vpop.permute.xlu0 %350 }
 0x15b   : > { %v335_v61 = vadd.f32 %v331_v56, %v321_v54  ;;  %v356_v14 = vadd.f32 %v351_v57, %v342_v55  ;;  %v2381_v54 = vld [vmem:[#allocation2 + $0x18] sm:$0xff]  ;;  %v897_v55 = vstv %s2365_s24  ;;  %s2453_s24 = sld [smem:[#allocation7 + $0x1c]] }
 0x15c   : > { %788 = vrot.lane.b32.xlu0 %v784_v58, %s1972_s19  ;;  %776 = vrot.lane.b32.xlu1 %v771_v59, %s1971_s6  ;;  %v898_v59 = vmul.f32 %v897_v55, %v2381_v54 }
 0x15d   : > { %v343_v63 = vadd.f32 %v341_v46, %v335_v61  ;;  %v877_v46 = vmul.f32 %v875_v42, %v2339_v7  ;;  %v911_v61 = vstv %s2374_s25  ;;  %s2460_s25 = sld [smem:[#allocation7 + $0x3e]] }
 0x15e   : > { %v353_v0 = vpop.permute.xlu1 %352  ;;  %v365_v1 = vpop.permute.xlu0 %364 }
 0x15f   : > { %v370_v19 = vadd.f32 %v365_v1, %v356_v14  ;;  %v357_v21 = vadd.f32 %v353_v0, %v343_v63  ;;  %v912_v0 = vmul.f32 %v911_v61, %v2381_v54  ;;  %v899_v1 = vmul.f32 %v897_v55, %v2391_v6 }
 0x160   : > { %810 = vrot.lane.b32.xlu0 %v806_v3, %s1967_s17  ;;  %790 = vrot.lane.b32.xlu1 %v785_v5, %s1972_s19  ;;  %v925_v3 = vstv %s2384_s20  ;;  %s2467_s20 = sld [smem:[#allocation7 + $0x40]] }
 0x162   : > { %v367_v8 = vpop.permute.xlu1 %366  ;;  %v379_v9 = vpop.permute.xlu0 %378 }
 0x163   : > { %v384_v23 = vadd.f32 %v379_v9, %v370_v19  ;;  %v371_v29 = vadd.f32 %v367_v8, %v357_v21  ;;  %v926_v9 = vmul.f32 %v925_v3, %v2381_v54  ;;  %v927_v19 = vmul.f32 %v925_v3, %v2391_v6 }
 0x164   : > { %824 = vrot.lane.b32.xlu0 %v820_v10, %s1968_s27  ;;  %812 = vrot.lane.b32.xlu1 %v807_v12, %s1967_s17  ;;  %v913_v10 = vmul.f32 %v911_v61, %v2391_v6  ;;  %v1031_v3 = vstv %s2444_s5  ;;  %s2527_s5 = sld [smem:[#allocation7 + $0x48]] }
 0x166   : > { %v381_v15 = vpop.permute.xlu1 %380  ;;  %v393_v16 = vpop.permute.xlu0 %392 }
 0x167   : > { %v398_v30 = vadd.f32 %v393_v16, %v384_v23  ;;  %v385_v34 = vadd.f32 %v381_v15, %v371_v29  ;;  %v953_v23 = vstv %s2400_s29  ;;  %s2486_s29 = sld [smem:[#allocation7 + $0x42]] }
 0x168   : > { %838 = vrot.lane.b32.xlu0 %v834_v17, %s1969_s28  ;;  %826 = vrot.lane.b32.xlu1 %v821_v18, %s1968_s27  ;;  %v940_v18 = vmul.f32 %v939_v13, %v2381_v54 }
 0x16a   : > { %v395_v24 = vpop.permute.xlu1 %394  ;;  %v407_v25 = vpop.permute.xlu0 %406 }
 0x16b   : > { %v412_v35 = vadd.f32 %v407_v25, %v398_v30  ;;  %v399_v40 = vadd.f32 %v395_v24, %v385_v34  ;;  %v523_v24 = vstv %s2402_s7  ;;  %v954_v30 = vmul.f32 %v953_v23, %v2381_v54  ;;  %s2495_s7 = sld [smem:[#allocation7 + $0x43]] }
 0x16c   : > { %852 = vrot.lane.b32.xlu0 %v848_v27, %s1970_s4  ;;  %840 = vrot.lane.b32.xlu1 %v835_v28, %s1969_s28  ;;  %v524_v33 = vmul.f32 %v523_v24, %v2214_v22  ;;  %v525_v22 = vmul.f32 %v523_v24, %v2220_v26  ;;  %v1003_v26 = vstv %s2425_s30  ;;  %s2511_s30 = sld [smem:[#allocation7 + $0x45]] }
 0x16e   : > { %v409_v36 = vpop.permute.xlu1 %408  ;;  %v421_v37 = vpop.permute.xlu0 %420 }
 0x16f   : > { %v426_v41 = vadd.f32 %v421_v37, %v412_v35  ;;  %v413_v43 = vadd.f32 %v409_v36, %v399_v40  ;;  %v967_v36 = vstv %s2409_s16  ;;  %s2502_s16 = sld [smem:[#allocation7 + $0x44]] }
 0x170   : > { %866 = vrot.lane.b32.xlu0 %v862_v31, %s1971_s6  ;;  %854 = vrot.lane.b32.xlu1 %v849_v38, %s1970_s4  ;;  %v968_v40 = vmul.f32 %v967_v36, %v2381_v54 }
 0x171   : > { %v434_v45 = vadd.f32 %v432_v39, %v426_v41  ;;  %v955_v41 = vmul.f32 %v953_v23, %v2391_v6 }
 0x172   : > { %v423_v47 = vpop.permute.xlu1 %422  ;;  %v443_v48 = vpop.permute.xlu0 %442 }
 0x173   : > { %v427_v53 = vadd.f32 %v423_v47, %v413_v43  ;;  %v448_v5 = vadd.f32 %v443_v48, %v434_v45  ;;  %v2432_v43 = vld [vmem:[#allocation2 + $0x19] sm:$0xff]  ;;  %v989_v45 = vstv %s2416_s26  ;;  %s2504_s26 = sld [smem:[#allocation7 + $0x23]] }
 0x174   : > { %880 = vrot.lane.b32.xlu0 %v876_v51, %s1972_s19  ;;  %868 = vrot.lane.b32.xlu1 %v863_v52, %s1971_s6  ;;  %v990_v52 = vmul.f32 %v989_v45, %v2432_v43 }
 0x175   : > { %v435_v56 = vadd.f32 %v433_v2, %v427_v53  ;;  %v969_v2 = vmul.f32 %v967_v36, %v2391_v6  ;;  %v2441_v53 = vld [vmem:[#allocation2 + $0x21] sm:$0xff] }
 0x176   : > { %v445_v57 = vpop.permute.xlu1 %444  ;;  %v457_v58 = vpop.permute.xlu0 %456 }
 0x177   : > { %v462_v12 = vadd.f32 %v457_v58, %v448_v5  ;;  %v449_v14 = vadd.f32 %v445_v57, %v435_v56  ;;  %v991_v57 = vmul.f32 %v989_v45, %v2441_v53  ;;  %v1004_v58 = vmul.f32 %v1003_v26, %v2432_v43 }
 0x178   : > { %902 = vrot.lane.b32.xlu0 %v898_v59, %s1967_s17  ;;  %882 = vrot.lane.b32.xlu1 %v877_v46, %s1972_s19  ;;  %v1017_v59 = vstv %s2435_s3  ;;  %s2518_s3 = sld [smem:[#allocation7 + $0x47]] }
 0x17a   : > { %v459_v62 = vpop.permute.xlu1 %458  ;;  %v471_v63 = vpop.permute.xlu0 %470 }
 0x17b   : > { %v476_v15 = vadd.f32 %v471_v63, %v462_v12  ;;  %v463_v20 = vadd.f32 %v459_v62, %v449_v14  ;;  %v1005_v63 = vmul.f32 %v1003_v26, %v2441_v53  ;;  %v1032_v12 = vmul.f32 %v1031_v3, %v2432_v43 }
 0x17c   : > { %916 = vrot.lane.b32.xlu0 %v912_v0, %s1968_s27  ;;  %904 = vrot.lane.b32.xlu1 %v899_v1, %s1967_s17  ;;  %v1018_v0 = vmul.f32 %v1017_v59, %v2432_v43 }
 0x17e   : > { %v473_v50 = vpop.permute.xlu1 %472  ;;  %v485_v8 = vpop.permute.xlu0 %484 }
 0x17f   : > { %v490_v21 = vadd.f32 %v485_v8, %v476_v15  ;;  %v477_v25 = vadd.f32 %v473_v50, %v463_v20  ;;  %v1045_v15 = vstv %s2451_s8  ;;  %s2537_s8 = sld [smem:[#allocation7 + $0x49]] }
 0x180   : > { %930 = vrot.lane.b32.xlu0 %v926_v9, %s1969_s28  ;;  %918 = vrot.lane.b32.xlu1 %v913_v10, %s1968_s27  ;;  %v1019_v10 = vmul.f32 %v1017_v59, %v2441_v53  ;;  %v1046_v23 = vmul.f32 %v1045_v15, %v2432_v43  ;;  %v1123_v59 = vstv %s2495_s7  ;;  %s2578_s7 = sld [smem:[#allocation7 + $0x4f]] }
 0x182   : > { %v487_v16 = vpop.permute.xlu1 %486  ;;  %v499_v17 = vpop.permute.xlu0 %498 }
 0x183   : > { %v504_v27 = vadd.f32 %v499_v17, %v490_v21  ;;  %v491_v34 = vadd.f32 %v487_v16, %v477_v25  ;;  %v615_v16 = vstv %s2453_s24  ;;  %v1033_v21 = vmul.f32 %v1031_v3, %v2441_v53  ;;  %s2546_s24 = sld [smem:[#allocation7 + $0x4a]] }
 0x184   : > { %944 = vrot.lane.b32.xlu0 %v940_v18, %s1970_s4  ;;  %932 = vrot.lane.b32.xlu1 %v927_v19, %s1969_s28  ;;  %v616_v24 = vmul.f32 %v615_v16, %v2242_v44  ;;  %v617_v44 = vmul.f32 %v615_v16, %v2248_v49  ;;  %v1095_v49 = vstv %s2476_s23  ;;  %s2562_s23 = sld [smem:[#allocation7 + $0x4c]] }
 0x186   : > { %v501_v28 = vpop.permute.xlu1 %500  ;;  %v513_v29 = vpop.permute.xlu0 %512 }
 0x187   : > { %v518_v35 = vadd.f32 %v513_v29, %v504_v27  ;;  %v505_v37 = vadd.f32 %v501_v28, %v491_v34  ;;  %v1059_v28 = vstv %s2460_s25  ;;  %v1047_v34 = vmul.f32 %v1045_v15, %v2441_v53  ;;  %s2553_s25 = sld [smem:[#allocation7 + $0x4b]] }
 0x188   : > { %958 = vrot.lane.b32.xlu0 %v954_v30, %s1971_s6  ;;  %946 = vrot.lane.b32.xlu1 %v941_v32, %s1970_s4 }
 0x189   : > { %v526_v31 = vadd.f32 %v524_v33, %v518_v35  ;;  %v1060_v35 = vmul.f32 %v1059_v28, %v2432_v43 }
 0x18a   : > { %v515_v38 = vpop.permute.xlu1 %514  ;;  %v535_v39 = vpop.permute.xlu0 %534 }
 0x18b   : > { %v519_v42 = vadd.f32 %v515_v38, %v505_v37  ;;  %v540_v46 = vadd.f32 %v535_v39, %v526_v31  ;;  %v2483_v37 = vld [vmem:[#allocation2 + $0x1a] sm:$0xff]  ;;  %v1081_v31 = vstv %s2467_s20  ;;  %s2555_s20 = sld [smem:[#allocation7 + $0x2a]] }
 0x18c   : > { %972 = vrot.lane.b32.xlu0 %v968_v40, %s1972_s19  ;;  %960 = vrot.lane.b32.xlu1 %v955_v41, %s1971_s6  ;;  %v1061_v41 = vmul.f32 %v1059_v28, %v2441_v53 }
 0x18d   : > { %v527_v47 = vadd.f32 %v525_v22, %v519_v42  ;;  %v1082_v22 = vmul.f32 %v1081_v31, %v2483_v37  ;;  %v2492_v42 = vld [vmem:[#allocation2 + $0x22] sm:$0xff] }
 0x18e   : > { %v537_v48 = vpop.permute.xlu1 %536  ;;  %v549_v51 = vpop.permute.xlu0 %548 }
 0x18f   : > { %v554_v1 = vadd.f32 %v549_v51, %v540_v46  ;;  %v541_v5 = vadd.f32 %v537_v48, %v527_v47  ;;  %v1083_v48 = vmul.f32 %v1081_v31, %v2492_v42  ;;  %v1096_v51 = vmul.f32 %v1095_v49, %v2483_v37 }
 0x190   : > { %994 = vrot.lane.b32.xlu0 %v990_v52, %s1967_s17  ;;  %974 = vrot.lane.b32.xlu1 %v969_v2, %s1972_s19  ;;  %v1109_v52 = vstv %s2486_s29  ;;  %s2569_s29 = sld [smem:[#allocation7 + $0x4e]] }
 0x192   : > { %v551_v55 = vpop.permute.xlu1 %550  ;;  %v563_v56 = vpop.permute.xlu0 %562 }
 0x193   : > { %v568_v50 = vadd.f32 %v563_v56, %v554_v1  ;;  %v555_v13 = vadd.f32 %v551_v55, %v541_v5  ;;  %v1097_v56 = vmul.f32 %v1095_v49, %v2492_v42  ;;  %v1124_v1 = vmul.f32 %v1123_v59, %v2483_v37 }
 0x194   : > { %996 = vrot.lane.b32.xlu1 %v991_v57, %s1967_s17  ;;  %1008 = vrot.lane.b32.xlu0 %v1004_v58, %s1968_s27  ;;  %v1110_v57 = vmul.f32 %v1109_v52, %v2483_v37 }
 0x196   : > { %v565_v61 = vpop.permute.xlu1 %564  ;;  %v577_v62 = vpop.permute.xlu0 %576 }
 0x197   : > { %v582_v14 = vadd.f32 %v577_v62, %v568_v50  ;;  %v569_v17 = vadd.f32 %v565_v61, %v555_v13  ;;  %v1137_v50 = vstv %s2502_s16  ;;  %s2588_s16 = sld [smem:[#allocation7 + $0x50]] }
 0x198   : > { %1010 = vrot.lane.b32.xlu1 %v1005_v63, %s1968_s27  ;;  %1022 = vrot.lane.b32.xlu0 %v1018_v0, %s1969_s28  ;;  %v1111_v0 = vmul.f32 %v1109_v52, %v2492_v42  ;;  %v1138_v15 = vmul.f32 %v1137_v50, %v2483_v37  ;;  %v1215_v52 = vstv %s2546_s24  ;;  %s2629_s24 = sld [smem:[#allocation7 + $0x56]] }
 0x19a   : > { %v579_v8 = vpop.permute.xlu1 %578  ;;  %v591_v9 = vpop.permute.xlu0 %590 }
 0x19b   : > { %v596_v18 = vadd.f32 %v591_v9, %v582_v14  ;;  %v583_v25 = vadd.f32 %v579_v8, %v569_v17  ;;  %v707_v8 = vstv %s2504_s26  ;;  %v1125_v14 = vmul.f32 %v1123_v59, %v2492_v42  ;;  %s2597_s26 = sld [smem:[#allocation7 + $0x51]] }
 0x19c   : > { %1024 = vrot.lane.b32.xlu1 %v1019_v10, %s1969_s28  ;;  %1036 = vrot.lane.b32.xlu0 %v1032_v12, %s1970_s4  ;;  %v708_v16 = vmul.f32 %v707_v8, %v2276_v4  ;;  %v709_v4 = vmul.f32 %v707_v8, %v2285_v11  ;;  %v1187_v11 = vstv %s2527_s5  ;;  %s2613_s5 = sld [smem:[#allocation7 + $0x53]] }
 0x19e   : > { %v593_v19 = vpop.permute.xlu1 %592  ;;  %v605_v20 = vpop.permute.xlu0 %604 }
 0x19f   : > { %v610_v27 = vadd.f32 %v605_v20, %v596_v18  ;;  %v597_v29 = vadd.f32 %v593_v19, %v583_v25  ;;  %v1151_v19 = vstv %s2511_s30  ;;  %v1139_v25 = vmul.f32 %v1137_v50, %v2492_v42  ;;  %s2604_s30 = sld [smem:[#allocation7 + $0x52]] }
 0x1a0   : > { %1038 = vrot.lane.b32.xlu1 %v1033_v21, %s1970_s4  ;;  %1050 = vrot.lane.b32.xlu0 %v1046_v23, %s1971_s6 }
 0x1a1   : > { %v618_v30 = vadd.f32 %v616_v24, %v610_v27  ;;  %v1152_v27 = vmul.f32 %v1151_v19, %v2483_v37 }
 0x1a2   : > { %v607_v32 = vpop.permute.xlu1 %606  ;;  %v627_v33 = vpop.permute.xlu0 %626 }
 0x1a3   : > { %v611_v36 = vadd.f32 %v607_v32, %v597_v29  ;;  %v632_v2 = vadd.f32 %v627_v33, %v618_v30  ;;  %v2534_v29 = vld [vmem:[#allocation2 + $0x1b] sm:$0xff]  ;;  %v1173_v30 = vstv %s2518_s3  ;;  %s2608_s3 = sld [smem:[#allocation7 + $0x31]] }
 0x1a4   : > { %1052 = vrot.lane.b32.xlu1 %v1047_v34, %s1971_s6  ;;  %1064 = vrot.lane.b32.xlu0 %v1060_v35, %s1972_s19  ;;  %v1153_v35 = vmul.f32 %v1151_v19, %v2492_v42 }
 0x1a5   : > { %v619_v38 = vadd.f32 %v617_v44, %v611_v36  ;;  %v1174_v44 = vmul.f32 %v1173_v30, %v2534_v29  ;;  %v2543_v36 = vld [vmem:[#allocation2 + $0x23] sm:$0xff] }
 0x1a6   : > { %v629_v39 = vpop.permute.xlu1 %628  ;;  %v641_v40 = vpop.permute.xlu0 %640 }
 0x1a7   : > { %v646_v58 = vadd.f32 %v641_v40, %v632_v2  ;;  %v633_v46 = vadd.f32 %v629_v39, %v619_v38  ;;  %v1175_v39 = vmul.f32 %v1173_v30, %v2543_v36  ;;  %v1188_v40 = vmul.f32 %v1187_v11, %v2534_v29 }
 0x1a8   : > { %1066 = vrot.lane.b32.xlu1 %v1061_v41, %s1972_s19  ;;  %1086 = vrot.lane.b32.xlu0 %v1082_v22, %s1967_s17  ;;  %v1201_v41 = vstv %s2537_s8  ;;  %s2620_s8 = sld [smem:[#allocation7 + $0x55]] }
 0x1aa   : > { %v643_v45 = vpop.permute.xlu1 %642  ;;  %v655_v47 = vpop.permute.xlu0 %654 }
 0x1ab   : > { %v660_v61 = vadd.f32 %v655_v47, %v646_v58  ;;  %v647_v3 = vadd.f32 %v643_v45, %v633_v46  ;;  %v1189_v47 = vmul.f32 %v1187_v11, %v2543_v36  ;;  %v1216_v58 = vmul.f32 %v1215_v52, %v2534_v29 }
 0x1ac   : > { %1088 = vrot.lane.b32.xlu1 %v1083_v48, %s1967_s17  ;;  %1100 = vrot.lane.b32.xlu0 %v1096_v51, %s1968_s27  ;;  %v1202_v48 = vmul.f32 %v1201_v41, %v2534_v29 }
 0x1ae   : > { %v657_v26 = vpop.permute.xlu1 %656  ;;  %v669_v55 = vpop.permute.xlu0 %668 }
 0x1af   : > { %v674_v5 = vadd.f32 %v669_v55, %v660_v61  ;;  %v661_v9 = vadd.f32 %v657_v26, %v647_v3  ;;  %v1229_v61 = vstv %s2553_s25  ;;  %s2639_s25 = sld [smem:[#allocation7 + $0x57]] }
 0x1b0   : > { %1102 = vrot.lane.b32.xlu1 %v1097_v56, %s1968_s27  ;;  %1114 = vrot.lane.b32.xlu0 %v1110_v57, %s1969_s28  ;;  %v1203_v57 = vmul.f32 %v1201_v41, %v2543_v36  ;;  %v1230_v50 = vmul.f32 %v1229_v61, %v2534_v29 }
 0x1b2   : > { %v671_v62 = vpop.permute.xlu1 %670  ;;  %v683_v63 = vpop.permute.xlu0 %682 }
 0x1b3   : > { %v688_v10 = vadd.f32 %v683_v63, %v674_v5  ;;  %v675_v17 = vadd.f32 %v671_v62, %v661_v9  ;;  %v799_v62 = vstv %s2555_s20  ;;  %v1217_v5 = vmul.f32 %v1215_v52, %v2543_v36  ;;  %s2648_s20 = sld [smem:[#allocation7 + $0x58]] }
 0x1b4   : > { %1116 = vrot.lane.b32.xlu1 %v1111_v0, %s1969_s28  ;;  %1128 = vrot.lane.b32.xlu0 %v1124_v1, %s1970_s4  ;;  %v800_v8 = vmul.f32 %v799_v62, %v2330_v60  ;;  %v801_v60 = vmul.f32 %v799_v62, %v2339_v7 }
 0x1b6   : > { %v685_v12 = vpop.permute.xlu1 %684  ;;  %v697_v13 = vpop.permute.xlu0 %696 }
 0x1b7   : > { %v702_v18 = vadd.f32 %v697_v13, %v688_v10  ;;  %v689_v20 = vadd.f32 %v685_v12, %v675_v17  ;;  %v1243_v12 = vstv %s2562_s23  ;;  %v1231_v17 = vmul.f32 %v1229_v61, %v2543_v36  ;;  %s2655_s23 = sld [smem:[#allocation7 + $0x59]] }
 0x1b8   : > { %1130 = vrot.lane.b32.xlu1 %v1125_v14, %s1970_s4  ;;  %1142 = vrot.lane.b32.xlu0 %v1138_v15, %s1971_s6 }
 0x1b9   : > { %v710_v21 = vadd.f32 %v708_v16, %v702_v18  ;;  %v1244_v18 = vmul.f32 %v1243_v12, %v2534_v29 }
 0x1ba   : > { %v699_v23 = vpop.permute.xlu1 %698  ;;  %v719_v24 = vpop.permute.xlu0 %718 }
 0x1bb   : > { %v703_v28 = vadd.f32 %v699_v23, %v689_v20  ;;  %v724_v22 = vadd.f32 %v719_v24, %v710_v21  ;;  %v2585_v21 = vld [vmem:[#allocation2 + $0x1c] sm:$0xff]  ;;  %v1265_v23 = vstv %s2569_s29  ;;  %s2659_s29 = sld [smem:[#allocation7 + $0x38]] }
 0x1bc   : > { %1144 = vrot.lane.b32.xlu1 %v1139_v25, %s1971_s6  ;;  %1156 = vrot.lane.b32.xlu0 %v1152_v27, %s1972_s19  ;;  %v1266_v7 = vmul.f32 %v1265_v23, %v2585_v21 }
 0x1bd   : > { %v711_v32 = vadd.f32 %v709_v4, %v703_v28  ;;  %v1245_v4 = vmul.f32 %v1243_v12, %v2543_v36 }
 0x1be   : > { %v721_v33 = vpop.permute.xlu1 %720  ;;  %v733_v34 = vpop.permute.xlu0 %732 }
 0x1bf   : > { %v738_v51 = vadd.f32 %v733_v34, %v724_v22  ;;  %v725_v2 = vadd.f32 %v721_v33, %v711_v32  ;;  %v2594_v32 = vld [vmem:[#allocation2 + $0x24] sm:$0xff]  ;;  %v1279_v33 = vstv %s2578_s7  ;;  %s2664_s7 = sld [smem:[#allocation7 + $0x5a]] }
 0x1c0   : > { %1158 = vrot.lane.b32.xlu1 %v1153_v35, %s1972_s19  ;;  %1178 = vrot.lane.b32.xlu0 %v1174_v44, %s1967_s17  ;;  %v1267_v44 = vmul.f32 %v1265_v23, %v2594_v32  ;;  %v1280_v11 = vmul.f32 %v1279_v33, %v2585_v21  ;;  %v1281_v22 = vmul.f32 %v1279_v33, %v2594_v32  ;;  %v2645_v23 = vld [vmem:[#allocation2 + $0x25] sm:$0xff]  ;;  %v1385_v33 = vstv %s2639_s25 }
 0x1c2   : > { %v735_v31 = vpop.permute.xlu1 %734  ;;  %v747_v38 = vpop.permute.xlu0 %746 }
 0x1c3   : > { %v752_v26 = vadd.f32 %v747_v38, %v738_v51  ;;  %v739_v59 = vadd.f32 %v735_v31, %v725_v2 }
 0x1c4   : > { %1180 = vrot.lane.b32.xlu1 %v1175_v39, %s1967_s17  ;;  %1192 = vrot.lane.b32.xlu0 %v1188_v40, %s1968_s27  ;;  %v1293_v39 = vstv %s2588_s16  ;;  %s2671_s16 = sld [smem:[#allocation7 + $0x5c]] }
 0x1c5   : > { %v1295_v2 = vmul.f32 %v1293_v39, %v2594_v32 }
 0x1c6   : > { %v749_v49 = vpop.permute.xlu1 %748  ;;  %v761_v45 = vpop.permute.xlu0 %760 }
 0x1c7   : > { %v766_v46 = vadd.f32 %v761_v45, %v752_v26  ;;  %v753_v63 = vadd.f32 %v749_v49, %v739_v59  ;;  %v1294_v49 = vmul.f32 %v1293_v39, %v2585_v21  ;;  %v1399_v39 = vstv %s2648_s20 }
 0x1c8   : > { %1194 = vrot.lane.b32.xlu1 %v1189_v47, %s1968_s27  ;;  %1206 = vrot.lane.b32.xlu0 %v1202_v48, %s1969_s28  ;;  %v1307_v48 = vstv %s2597_s26  ;;  %s2680_s26 = sld [smem:[#allocation7 + $0x5d]] }
 0x1c9   : > { %v1308_v26 = vmul.f32 %v1307_v48, %v2585_v21  ;;  %v1309_v61 = vmul.f32 %v1307_v48, %v2594_v32  ;;  %v983_v48 = vstv %s2659_s29 }
 0x1ca   : > { %v763_v55 = vpop.permute.xlu1 %762  ;;  %v775_v56 = vpop.permute.xlu0 %774 }
 0x1cb   : > { %v780_v0 = vadd.f32 %v775_v56, %v766_v46  ;;  %v767_v9 = vadd.f32 %v763_v55, %v753_v63 }
 0x1cc   : > { %1208 = vrot.lane.b32.xlu1 %v1203_v57, %s1969_s28  ;;  %1220 = vrot.lane.b32.xlu0 %v1216_v58, %s1970_s4  ;;  %v1321_v57 = vstv %s2604_s30  ;;  %v891_v58 = vstv %s2608_s3  ;;  %s2690_s30 = sld [smem:[#allocation7 + $0x5e]]  ;;  %s2699_s3 = sld [smem:[#allocation7 + $0x5f]] }
 0x1cd   : > { %v1322_v62 = vmul.f32 %v1321_v57, %v2585_v21  ;;  %v893_v12 = vmul.f32 %v891_v58, %v2391_v6 }
 0x1ce   : > { %v777_v1 = vpop.permute.xlu1 %776  ;;  %v789_v3 = vpop.permute.xlu0 %788 }
 0x1cf   : > { %v794_v10 = vadd.f32 %v789_v3, %v780_v0  ;;  %v781_v13 = vadd.f32 %v777_v1, %v767_v9  ;;  %v892_v0 = vmul.f32 %v891_v58, %v2381_v54  ;;  %v1335_v3 = vstv %s2613_s5  ;;  %s2706_s5 = sld [smem:[#allocation7 + $0x60]] }
 0x1d0   : > { %1222 = vrot.lane.b32.xlu1 %v1217_v5, %s1970_s4  ;;  %1234 = vrot.lane.b32.xlu0 %v1230_v50, %s1971_s6  ;;  %v1323_v9 = vmul.f32 %v1321_v57, %v2594_v32  ;;  %v1427_v58 = vstv %s2664_s7 }
 0x1d1   : > { %v802_v14 = vadd.f32 %v800_v8, %v794_v10  ;;  %v1336_v10 = vmul.f32 %v1335_v3, %v2585_v21 }
 0x1d2   : > { %v791_v15 = vpop.permute.xlu1 %790  ;;  %v811_v16 = vpop.permute.xlu0 %810 }
 0x1d3   : > { %v795_v19 = vadd.f32 %v791_v15, %v781_v13  ;;  %v816_v20 = vadd.f32 %v811_v16, %v802_v14  ;;  %v2636_v14 = vld [vmem:[#allocation2 + $0x1d] sm:$0xff]  ;;  %v1357_v15 = vstv %s2620_s8  ;;  %s2710_s8 = sld [smem:[#allocation7 + $0x3f]] }
 0x1d4   : > { %1236 = vrot.lane.b32.xlu1 %v1231_v17, %s1971_s6  ;;  %1248 = vrot.lane.b32.xlu0 %v1244_v18, %s1972_s19  ;;  %v1358_v6 = vmul.f32 %v1357_v15, %v2636_v14 }
 0x1d5   : > { %v803_v24 = vadd.f32 %v801_v60, %v795_v19  ;;  %v1337_v60 = vmul.f32 %v1335_v3, %v2594_v32  ;;  %v2687_v3 = vld [vmem:[#allocation2 + $0x1e] sm:$0xff] }
 0x1d6   : > { %v813_v25 = vpop.permute.xlu1 %812  ;;  %v825_v27 = vpop.permute.xlu0 %824 }
 0x1d7   : > { %v817_v28 = vadd.f32 %v813_v25, %v803_v24  ;;  %v830_v30 = vadd.f32 %v825_v27, %v816_v20  ;;  %v1371_v24 = vstv %s2629_s24  ;;  %s2715_s24 = sld [smem:[#allocation7 + $0x61]] }
 0x1d8   : > { %1250 = vrot.lane.b32.xlu1 %v1245_v4, %s1972_s19  ;;  %1270 = vrot.lane.b32.xlu0 %v1266_v7, %s1967_s17  ;;  %v1359_v4 = vmul.f32 %v1357_v15, %v2645_v23  ;;  %v1372_v7 = vmul.f32 %v1371_v24, %v2636_v14 }
 0x1da   : > { %v827_v34 = vpop.permute.xlu1 %826  ;;  %v839_v35 = vpop.permute.xlu0 %838 }
 0x1db   : > { %v831_v31 = vadd.f32 %v827_v34, %v817_v28  ;;  %v844_v38 = vadd.f32 %v839_v35, %v830_v30 }
 0x1dc   : > { %1272 = vrot.lane.b32.xlu1 %v1267_v44, %s1967_s17  ;;  %1284 = vrot.lane.b32.xlu0 %v1280_v11, %s1968_s27  ;;  %v1373_v44 = vmul.f32 %v1371_v24, %v2645_v23  ;;  %v1386_v11 = vmul.f32 %v1385_v33, %v2636_v14 }
 0x1de   : > { %v841_v40 = vpop.permute.xlu1 %840  ;;  %v853_v41 = vpop.permute.xlu0 %852 }
 0x1df   : > { %v845_v45 = vadd.f32 %v841_v40, %v831_v31  ;;  %v858_v47 = vadd.f32 %v853_v41, %v844_v38 }
 0x1e0   : > { %1286 = vrot.lane.b32.xlu1 %v1281_v22, %s1968_s27  ;;  %1298 = vrot.lane.b32.xlu0 %v1294_v49, %s1969_s28  ;;  %v1387_v22 = vmul.f32 %v1385_v33, %v2645_v23  ;;  %v1400_v49 = vmul.f32 %v1399_v39, %v2636_v14 }
 0x1e2   : > { %v855_v51 = vpop.permute.xlu1 %854  ;;  %v867_v52 = vpop.permute.xlu0 %866 }
 0x1e3   : > { %v859_v55 = vadd.f32 %v855_v51, %v845_v45  ;;  %v872_v56 = vadd.f32 %v867_v52, %v858_v47  ;;  %v1413_v47 = vstv %s2655_s23 }
 0x1e4   : > { %1300 = vrot.lane.b32.xlu1 %v1295_v2, %s1969_s28  ;;  %1312 = vrot.lane.b32.xlu0 %v1308_v26, %s1970_s4  ;;  %v1401_v26 = vmul.f32 %v1399_v39, %v2645_v23 }
 0x1e6   : > { %v869_v59 = vpop.permute.xlu1 %868  ;;  %v881_v46 = vpop.permute.xlu0 %880 }
 0x1e7   : > { %v873_v63 = vadd.f32 %v869_v59, %v859_v55  ;;  %v886_v1 = vadd.f32 %v881_v46, %v872_v56  ;;  %v1414_v55 = vmul.f32 %v1413_v47, %v2636_v14  ;;  %v984_v56 = vmul.f32 %v983_v48, %v2432_v43 }
 0x1e8   : > { %1314 = vrot.lane.b32.xlu1 %v1309_v61, %s1970_s4  ;;  %1326 = vrot.lane.b32.xlu0 %v1322_v62, %s1971_s6 }
 0x1e9   : > { %v894_v5 = vadd.f32 %v892_v0, %v886_v1  ;;  %v1428_v0 = vmul.f32 %v1427_v58, %v2636_v14  ;;  %v985_v1 = vmul.f32 %v983_v48, %v2441_v53  ;;  %v1463_v53 = vstv %s2680_s26 }
 0x1ea   : > { %v883_v50 = vpop.permute.xlu1 %882  ;;  %v903_v8 = vpop.permute.xlu0 %902 }
 0x1eb   : > { %v887_v13 = vadd.f32 %v883_v50, %v873_v63  ;;  %v908_v54 = vadd.f32 %v903_v8, %v894_v5  ;;  %v1415_v63 = vmul.f32 %v1413_v47, %v2645_v23  ;;  %v1449_v5 = vstv %s2671_s16  ;;  %s1548_s16 = scalar_lea.sflag [#allocation5], %s2118_s14 }
 0x1ec   : > { %1328 = vrot.lane.b32.xlu1 %v1323_v9, %s1971_s6  ;;  %1340 = vrot.lane.b32.xlu0 %v1336_v10, %s1972_s19  ;;  %v1429_v10 = vmul.f32 %v1427_v58, %v2645_v23 }
 0x1ed   : > { %v895_v16 = vadd.f32 %v893_v12, %v887_v13  ;;  %v1450_v12 = vmul.f32 %v1449_v5, %v2687_v3  ;;  %v2696_v13 = vld [vmem:[#allocation2 + $0x26] sm:$0xff] }
 0x1ee   : > { %v905_v17 = vpop.permute.xlu1 %904  ;;  %v917_v18 = vpop.permute.xlu0 %916 }
 0x1ef   : > { %v909_v19 = vadd.f32 %v905_v17, %v895_v16  ;;  %v922_v20 = vadd.f32 %v917_v18, %v908_v54  ;;  %v1451_v16 = vmul.f32 %v1449_v5, %v2696_v13  ;;  %v1464_v17 = vmul.f32 %v1463_v53, %v2687_v3 }
 0x1f0   : > { %1342 = vrot.lane.b32.xlu1 %v1337_v60, %s1972_s19  ;;  %1362 = vrot.lane.b32.xlu0 %v1358_v6, %s1967_s17  ;;  %v1477_v18 = vstv %s2690_s30 }
 0x1f1   : > { %v1478_v24 = vmul.f32 %v1477_v18, %v2687_v3  ;;  %v1479_v33 = vmul.f32 %v1477_v18, %v2696_v13 }
 0x1f2   : > { %v919_v25 = vpop.permute.xlu1 %918  ;;  %v931_v27 = vpop.permute.xlu0 %930 }
 0x1f3   : > { %v923_v28 = vadd.f32 %v919_v25, %v909_v19  ;;  %v936_v30 = vadd.f32 %v931_v27, %v922_v20  ;;  %v1465_v20 = vmul.f32 %v1463_v53, %v2696_v13  ;;  %v1491_v27 = vstv %s2699_s3 }
 0x1f4   : > { %1364 = vrot.lane.b32.xlu1 %v1359_v4, %s1967_s17  ;;  %1376 = vrot.lane.b32.xlu0 %v1372_v7, %s1968_s27 }
 0x1f6   : > { %v933_v34 = vpop.permute.xlu1 %932  ;;  %v945_v35 = vpop.permute.xlu0 %944 }
 0x1f7   : > { %v937_v31 = vadd.f32 %v933_v34, %v923_v28  ;;  %v950_v38 = vadd.f32 %v945_v35, %v936_v30  ;;  %v1492_v34 = vmul.f32 %v1491_v27, %v2687_v3 }
 0x1f8   : > { %1378 = vrot.lane.b32.xlu1 %v1373_v44, %s1968_s27  ;;  %1390 = vrot.lane.b32.xlu0 %v1386_v11, %s1969_s28  ;;  %v1505_v11 = vstv %s2706_s5 }
 0x1fa   : > { %v947_v40 = vpop.permute.xlu1 %946  ;;  %v959_v41 = vpop.permute.xlu0 %958 }
 0x1fb   : > { %v951_v45 = vadd.f32 %v947_v40, %v937_v31  ;;  %v964_v51 = vadd.f32 %v959_v41, %v950_v38  ;;  %v1075_v31 = vstv %s2710_s8 }
 0x1fc   : > { %1392 = vrot.lane.b32.xlu1 %v1387_v22, %s1969_s28  ;;  %1404 = vrot.lane.b32.xlu0 %v1400_v49, %s1970_s4  ;;  %v1493_v22 = vmul.f32 %v1491_v27, %v2696_v13  ;;  %v1506_v49 = vmul.f32 %v1505_v11, %v2687_v3  ;;  %v1076_v47 = vmul.f32 %v1075_v31, %v2483_v37 }
 0x1fd   : > { %v1077_v58 = vmul.f32 %v1075_v31, %v2492_v42 }
 0x1fe   : > { %v961_v52 = vpop.permute.xlu1 %960  ;;  %v973_v2 = vpop.permute.xlu0 %972 }
 0x1ff   : > { %v978_v57 = vadd.f32 %v973_v2, %v964_v51  ;;  %v965_v59 = vadd.f32 %v961_v52, %v951_v45  ;;  %v1519_v51 = vstv %s2715_s24 }
 0x200   : > { %1406 = vrot.lane.b32.xlu1 %v1401_v26, %s1970_s4  ;;  %1418 = vrot.lane.b32.xlu0 %v1414_v55, %s1971_s6 }
 0x201   : > { %v986_v46 = vadd.f32 %v984_v56, %v978_v57  ;;  %v1507_v56 = vmul.f32 %v1505_v11, %v2696_v13  ;;  %v1520_v57 = vmul.f32 %v1519_v51, %v2687_v3 }
 0x202   : > { %v975_v61 = vpop.permute.xlu1 %974  ;;  %v995_v62 = vpop.permute.xlu0 %994 }
 0x203   : > { %v979_v43 = vadd.f32 %v975_v61, %v965_v59  ;;  %v1000_v60 = vadd.f32 %v995_v62, %v986_v46  ;;  %v1521_v62 = vmul.f32 %v1519_v51, %v2696_v13 }
 0x204   : > { %1420 = vrot.lane.b32.xlu1 %v1415_v63, %s1971_s6  ;;  %1432 = vrot.lane.b32.xlu0 %v1428_v0, %s1972_s19 }
 0x205   : > { %v987_v50 = vadd.f32 %v985_v1, %v979_v43 }
 0x206   : > { %v997_v8 = vpop.permute.xlu1 %996  ;;  %v1009_v9 = vpop.permute.xlu0 %1008 }
 0x207   : > { %v1014_v25 = vadd.f32 %v1009_v9, %v1000_v60  ;;  %v1001_v4 = vadd.f32 %v997_v8, %v987_v50 }
 0x208   : > { %1434 = vrot.lane.b32.xlu1 %v1429_v10, %s1972_s19  ;;  %1454 = vrot.lane.b32.xlu0 %v1450_v12, %s1967_s17 }
 0x20a   : > { %v1011_v54 = vpop.permute.xlu1 %1010  ;;  %v1023_v15 = vpop.permute.xlu0 %1022 }
 0x20b   : > { %v1028_v7 = vadd.f32 %v1023_v15, %v1014_v25  ;;  %v1015_v35 = vadd.f32 %v1011_v54, %v1001_v4 }
 0x20c   : > { %1456 = vrot.lane.b32.xlu1 %v1451_v16, %s1967_s17  ;;  %1468 = vrot.lane.b32.xlu0 %v1464_v17, %s1968_s27  ;;  %s1732_s17 = sld [smem:[#allocation7 + $0x46]] }
 0x20e   : > { %v1025_v6 = vpop.permute.xlu1 %1024  ;;  %v1037_v19 = vpop.permute.xlu0 %1036 }
 0x20f   : > { %v1042_v44 = vadd.f32 %v1037_v19, %v1028_v7  ;;  %v1029_v38 = vadd.f32 %v1025_v6, %v1015_v35 }
 0x210   : > { %1470 = vrot.lane.b32.xlu1 %v1465_v20, %s1968_s27  ;;  %1482 = vrot.lane.b32.xlu0 %v1478_v24, %s1969_s28  ;;  %s1739_s27 = sld [smem:[#allocation7 + $0x4d]] }
 0x212   : > { %v1039_v28 = vpop.permute.xlu1 %1038  ;;  %v1051_v30 = vpop.permute.xlu0 %1050  ;;  %v1167_v54 = vstv %s1732_s17 }
 0x213   : > { %v1056_v39 = vadd.f32 %v1051_v30, %v1042_v44  ;;  %v1043_v45 = vadd.f32 %v1039_v28, %v1029_v38  ;;  %v1168_v19 = vmul.f32 %v1167_v54, %v2534_v29  ;;  %v1169_v7 = vmul.f32 %v1167_v54, %v2543_v36 }
 0x214   : > { %1484 = vrot.lane.b32.xlu1 %v1479_v33, %s1969_s28  ;;  %1496 = vrot.lane.b32.xlu0 %v1492_v34, %s1970_s4  ;;  %s1746_s28 = sld [smem:[#allocation7 + $0x54]] }
 0x216   : > { %v1053_v40 = vpop.permute.xlu1 %1052  ;;  %v1065_v41 = vpop.permute.xlu0 %1064 }
 0x217   : > { %v1070_v48 = vadd.f32 %v1065_v41, %v1056_v39  ;;  %v1057_v52 = vadd.f32 %v1053_v40, %v1043_v45  ;;  %v1259_v45 = vstv %s1739_s27 }
 0x218   : > { %1498 = vrot.lane.b32.xlu1 %v1493_v22, %s1970_s4  ;;  %1510 = vrot.lane.b32.xlu0 %v1506_v49, %s1971_s6  ;;  %s1753_s4 = sld [smem:[#allocation7 + $0x5b]] }
 0x219   : > { %v1078_v2 = vadd.f32 %v1076_v47, %v1070_v48 }
 0x21a   : > { %v1067_v26 = vpop.permute.xlu1 %1066  ;;  %v1087_v55 = vpop.permute.xlu0 %1086 }
 0x21b   : > { %v1071_v59 = vadd.f32 %v1067_v26, %v1057_v52  ;;  %v1092_v1 = vadd.f32 %v1087_v55, %v1078_v2  ;;  %v1260_v26 = vmul.f32 %v1259_v45, %v2585_v21 }
 0x21c   : > { %1512 = vrot.lane.b32.xlu1 %v1507_v56, %s1971_s6  ;;  %1524 = vrot.lane.b32.xlu0 %v1520_v57, %s1972_s19  ;;  %s1656_s6 = sshll.u32 %s2118_s14, 4 }
 0x21d   : > { %v1079_v37 = vadd.f32 %v1077_v58, %v1071_v59  ;;  %s175_s25 = scalar_lea.vmem [#allocation8], %s1656_s6 }
 0x21e   : > { %v1089_v46 = vpop.permute.xlu1 %1088  ;;  %v1101_v61 = vpop.permute.xlu0 %1100  ;;  %s1561_s20 = sshll.u32 %s175_s25, 4  ;;  %s2753_s20 = int_to_ptr.vmem [resolvable:$true] %s1561_s20 }
 0x21f   : > { %v1106_v50 = vadd.f32 %v1101_v61, %v1092_v1  ;;  %v1093_v42 = vadd.f32 %v1089_v46, %v1079_v37  ;;  %v1261_v37 = vmul.f32 %v1259_v45, %v2594_v32  ;;  %s1889_s26 = scalar_lea.vmem %s2753_s20, 256 }
 0x220   : > { %1526 = vrot.lane.b32.xlu1 %v1521_v62, %s1972_s19  ;;  %s1766_s19 = sshll.u32 %s2012_s13, 8  ;;  %p1890_p13 = scmp.ne.s32.totalorder %s2753_s20, %s1889_s26 }
 0x221   : > { %s2751_s7 = scalar_lea.hbm %s2799_s2, %s1766_s19  ;;  %s1973_s13 = smov [#allocation8]  }
 0x222   : > { %v1103_v63 = vpop.permute.xlu1 %1102  ;;  %v1115_v0 = vpop.permute.xlu0 %1114  ;;  %p1891_p8 = pnand %p1890_p13, %p2813_p12  ;;  %s1893_s30 = sshll.u32 %s1973_s13, 4  ;;  %s1894_s30 = int_to_ptr.vmem [resolvable:$false] %s1893_s30 }
 0x223   : > { %v1120_v8 = vadd.f32 %v1115_v0, %v1106_v50  ;;  %v1107_v12 = vadd.f32 %v1103_v63, %v1093_v42  ;;  %s1895_s3 = scalar_lea.vmem %s1894_s30, 512  ;;  %p1896_p10 = scmp.lt.s32.totalorder %s2753_s20, %s1894_s30 }
 0x224   : > { %p1892_p9 = pneg %p1891_p8  ;;  %p1897_p1 = scmp.lt.s32.totalorder %s1895_s3, %s1889_s26 }
 0x226   : > { %v1117_v43 = vpop.permute.xlu1 %1116  ;;  %v1129_v5 = vpop.permute.xlu0 %1128  ;;  %p1898_p4 = por %p1897_p1, %p1896_p10 }
 0x227   : > { %v1134_v53 = vadd.f32 %v1129_v5, %v1120_v8  ;;  %v1121_v15 = vadd.f32 %v1117_v43, %v1107_v12 }
 0x228   : > { %p1899_p11 = pnand %p1898_p4, %p1892_p9 }
 0x22a   : > { %v1131_v9 = vpop.permute.xlu1 %1130  ;;  %v1143_v10 = vpop.permute.xlu0 %1142 }
 0x22b   : > { %v1148_v16 = vadd.f32 %v1143_v10, %v1134_v53  ;;  %v1135_v60 = vadd.f32 %v1131_v9, %v1121_v15  ;;  %v1351_v53 = vstv %s1746_s28 }
 0x22e   : > { %v1145_v17 = vpop.permute.xlu1 %1144  ;;  %v1157_v18 = vpop.permute.xlu0 %1156 }
 0x22f   : > { %v1162_v6 = vadd.f32 %v1157_v18, %v1148_v16  ;;  %v1149_v20 = vadd.f32 %v1145_v17, %v1135_v60  ;;  %v1352_v60 = vmul.f32 %v1351_v53, %v2636_v14 }
 0x231   : > { %v1170_v24 = vadd.f32 %v1168_v19, %v1162_v6 }
 0x232   : > { %v1159_v25 = vpop.permute.xlu1 %1158  ;;  %v1179_v27 = vpop.permute.xlu0 %1178 }
 0x233   : > { %v1163_v4 = vadd.f32 %v1159_v25, %v1149_v20  ;;  %v1184_v44 = vadd.f32 %v1179_v27, %v1170_v24  ;;  %v1353_v27 = vmul.f32 %v1351_v53, %v2645_v23 }
 0x235   : > { %v1171_v28 = vadd.f32 %v1169_v7, %v1163_v4 }
 0x236   : > { %v1181_v30 = vpop.permute.xlu1 %1180  ;;  %v1193_v33 = vpop.permute.xlu0 %1192 }
 0x237   : > { %v1198_v38 = vadd.f32 %v1193_v33, %v1184_v44  ;;  %v1185_v39 = vadd.f32 %v1181_v30, %v1171_v28 }
 0x23a   : > { %v1195_v34 = vpop.permute.xlu1 %1194  ;;  %v1207_v35 = vpop.permute.xlu0 %1206 }
 0x23b   : > { %v1212_v40 = vadd.f32 %v1207_v35, %v1198_v38  ;;  %v1199_v22 = vadd.f32 %v1195_v34, %v1185_v39 }
 0x23e   : > { %v1209_v11 = vpop.permute.xlu1 %1208  ;;  %v1221_v31 = vpop.permute.xlu0 %1220 }
 0x23f   : > { %v1226_v49 = vadd.f32 %v1221_v31, %v1212_v40  ;;  %v1213_v47 = vadd.f32 %v1209_v11, %v1199_v22 }
 0x242   : > { %v1223_v29 = vpop.permute.xlu1 %1222  ;;  %v1235_v41 = vpop.permute.xlu0 %1234 }
 0x243   : > { %v1240_v48 = vadd.f32 %v1235_v41, %v1226_v49  ;;  %v1227_v52 = vadd.f32 %v1223_v29, %v1213_v47  ;;  %v1443_v41 = vstv %s1753_s4 }
 0x246   : > { %v1237_v36 = vpop.permute.xlu1 %1236  ;;  %v1249_v51 = vpop.permute.xlu0 %1248 }
 0x247   : > { %v1254_v2 = vadd.f32 %v1249_v51, %v1240_v48  ;;  %v1241_v55 = vadd.f32 %v1237_v36, %v1227_v52  ;;  %v1444_v36 = vmul.f32 %v1443_v41, %v2687_v3 }
 0x249   : > { %v1262_v56 = vadd.f32 %v1260_v26, %v1254_v2 }
 0x24a   : > { %v1251_v57 = vpop.permute.xlu1 %1250  ;;  %v1271_v58 = vpop.permute.xlu0 %1270 }
 0x24b   : > { %v1255_v59 = vadd.f32 %v1251_v57, %v1241_v55  ;;  %v1276_v1 = vadd.f32 %v1271_v58, %v1262_v56  ;;  %v1445_v56 = vmul.f32 %v1443_v41, %v2696_v13 }
 0x24d   : > { %v1263_v46 = vadd.f32 %v1261_v37, %v1255_v59 }
 0x24e   : > { %v1273_v61 = vpop.permute.xlu1 %1272  ;;  %v1285_v62 = vpop.permute.xlu0 %1284 }
 0x24f   : > { %v1290_v50 = vadd.f32 %v1285_v62, %v1276_v1  ;;  %v1277_v42 = vadd.f32 %v1273_v61, %v1263_v46 }
 0x252   : > { %v1287_v63 = vpop.permute.xlu1 %1286  ;;  %v1299_v0 = vpop.permute.xlu0 %1298 }
 0x253   : > { %v1304_v8 = vadd.f32 %v1299_v0, %v1290_v50  ;;  %v1291_v10 = vadd.f32 %v1287_v63, %v1277_v42 }
 0x256   : > { %v1301_v43 = vpop.permute.xlu1 %1300  ;;  %v1313_v5 = vpop.permute.xlu0 %1312 }
 0x257   : > { %v1318_v12 = vadd.f32 %v1313_v5, %v1304_v8  ;;  %v1305_v54 = vadd.f32 %v1301_v43, %v1291_v10 }
 0x25a   : > { %v1315_v21 = vpop.permute.xlu1 %1314  ;;  %v1327_v9 = vpop.permute.xlu0 %1326 }
 0x25b   : > { %v1332_v15 = vadd.f32 %v1327_v9, %v1318_v12  ;;  %v1319_v17 = vadd.f32 %v1315_v21, %v1305_v54 }
 0x25e   : > { %v1329_v32 = vpop.permute.xlu1 %1328  ;;  %v1341_v16 = vpop.permute.xlu0 %1340 }
 0x25f   : > { %v1346_v18 = vadd.f32 %v1341_v16, %v1332_v15  ;;  %v1333_v6 = vadd.f32 %v1329_v32, %v1319_v17 }
 0x261   : > { %v1354_v19 = vadd.f32 %v1352_v60, %v1346_v18 }
 0x262   : > { %v1343_v20 = vpop.permute.xlu1 %1342  ;;  %v1363_v24 = vpop.permute.xlu0 %1362 }
 0x263   : > { %v1347_v25 = vadd.f32 %v1343_v20, %v1333_v6  ;;  %v1368_v34 = vadd.f32 %v1363_v24, %v1354_v19 }
 0x265   : > { %v1355_v4 = vadd.f32 %v1353_v27, %v1347_v25 }
 0x266   : > { %v1365_v7 = vpop.permute.xlu1 %1364  ;;  %v1377_v28 = vpop.permute.xlu0 %1376 }
 0x267   : > { %v1382_v11 = vadd.f32 %v1377_v28, %v1368_v34  ;;  %v1369_v31 = vadd.f32 %v1365_v7, %v1355_v4 }
 0x26a   : > { %v1379_v30 = vpop.permute.xlu1 %1378  ;;  %v1391_v33 = vpop.permute.xlu0 %1390 }
 0x26b   : > { %v1396_v38 = vadd.f32 %v1391_v33, %v1382_v11  ;;  %v1383_v40 = vadd.f32 %v1379_v30, %v1369_v31 }
 0x26e   : > { %v1393_v35 = vpop.permute.xlu1 %1392  ;;  %v1405_v44 = vpop.permute.xlu0 %1404 }
 0x26f   : > { %v1410_v29 = vadd.f32 %v1405_v44, %v1396_v38  ;;  %v1397_v22 = vadd.f32 %v1393_v35, %v1383_v40 }
 0x272   : > { %v1407_v14 = vpop.permute.xlu1 %1406  ;;  %v1419_v39 = vpop.permute.xlu0 %1418 }
 0x273   : > { %v1424_v49 = vadd.f32 %v1419_v39, %v1410_v29  ;;  %v1411_v47 = vadd.f32 %v1407_v14, %v1397_v22 }
 0x276   : > { %v1421_v23 = vpop.permute.xlu1 %1420  ;;  %v1433_v45 = vpop.permute.xlu0 %1432 }
 0x277   : > { %v1438_v48 = vadd.f32 %v1433_v45, %v1424_v49  ;;  %v1425_v51 = vadd.f32 %v1421_v23, %v1411_v47 }
 0x279   : > { %v1446_v52 = vadd.f32 %v1444_v36, %v1438_v48 }
 0x27a   : > { %v1435_v2 = vpop.permute.xlu1 %1434  ;;  %v1455_v26 = vpop.permute.xlu0 %1454 }
 0x27b   : > { %v1439_v55 = vadd.f32 %v1435_v2, %v1425_v51  ;;  %v1460_v61 = vadd.f32 %v1455_v26, %v1446_v52 }
 0x27d   : > { %v1447_v57 = vadd.f32 %v1445_v56, %v1439_v55 }
 0x27e   : > { %v1457_v58 = vpop.permute.xlu1 %1456  ;;  %v1469_v59 = vpop.permute.xlu0 %1468 }
 0x27f   : > { %v1474_v0 = vadd.f32 %v1469_v59, %v1460_v61  ;;  %v1461_v1 = vadd.f32 %v1457_v58, %v1447_v57 }
 0x282   : > { %v1471_v37 = vpop.permute.xlu1 %1470  ;;  %v1483_v46 = vpop.permute.xlu0 %1482 }
 0x283   : > { %v1488_v43 = vadd.f32 %v1483_v46, %v1474_v0  ;;  %v1475_v50 = vadd.f32 %v1471_v37, %v1461_v1 }
 0x286   : > { %v1485_v62 = vpop.permute.xlu1 %1484  ;;  %v1497_v63 = vpop.permute.xlu0 %1496 }
 0x287   : > { %v1502_v42 = vadd.f32 %v1497_v63, %v1488_v43  ;;  %v1489_v8 = vadd.f32 %v1485_v62, %v1475_v50 }
 0x28a   : > { %v1499_v5 = vpop.permute.xlu1 %1498  ;;  %v1511_v3 = vpop.permute.xlu0 %1510 }
 0x28b   : > { %v1516_v21 = vadd.f32 %v1511_v3, %v1502_v42  ;;  %v1503_v13 = vadd.f32 %v1499_v5, %v1489_v8 }
 0x28e   : > { %v1513_v9 = vpop.permute.xlu1 %1512  ;;  %v1525_v10 = vpop.permute.xlu0 %1524 }
 0x28f   : > { %v1530_v12 = vadd.f32 %v1525_v10, %v1516_v21  ;;  %v1517_v53 = vadd.f32 %v1513_v9, %v1503_v13 }
 0x291   : > { %v1532_v54 = vsub.f32 0.0, %v1530_v12 }
 0x292   : > { %v1527_v15 = vpop.permute.xlu1 %1526 }
 0x293   : > { %v1534_v32 = vmul.f32 1.442695, %v1532_v54  ;;  %v1531_v16 = vadd.f32 %v1527_v15, %v1517_v53 }
 0x295   : > { %1836 = vpow2.f32 %v1534_v32  ;;  %v1533_v17 = vsub.f32 0.0, %v1531_v16 }
 0x297   : > { %v1536_v18 = vmul.f32 1.442695, %v1533_v17 }
 0x299   : > { %1838 = vpow2.f32 %v1536_v18 }
 0x29f   : > { %v1837_v60 = vpop.eup %1836 }
 0x2a0   : > { %v1538_v6 = vadd.f32 1.0, %v1837_v60 }
 0x2a2   : > { %1840 = vrcp.f32 %v1538_v6 }
 0x2a3   : > { %v1839_v19 = vpop.eup %1838 }
 0x2a4   : > { %v1539_v20 = vadd.f32 1.0, %v1839_v19 }
 0x2a6   : > { %1842 = vrcp.f32 %v1539_v20 }
 0x2ac   : > { %v1841_v24 = vpop.eup %1840 }
 0x2ad   : > { %1545 = vst.msk [vmem:[%s175_s25] sm:$0xff] %vm1544_vm6, %v1841_v24 }
 0x2b0   : > { %v1843_v25 = vpop.eup %1842 }
 0x2b1   : > { %1546 = vst.msk [vmem:[%s175_s25 + $0x8] sm:$0xff] %vm1544_vm6, %v1843_v25 }
 0x2b2   : > { %1902 = shalt.err (!%p1899_p11)
}
 0x2b3   : > { %s1903_s5 = scalar_lea.hbm %s2751_s7, 256  ;;  %s1907_s17 = scalar_lea.hbm %s2799_s2, 512 }
 0x2b4   : > { %p1904_p0 = scmp.ne.s32.totalorder %s2751_s7, %s1903_s5  ;;  %p1908_p6 = scmp.lt.u32.totalorder %s2751_s7, %s2799_s2 }
 0x2b5   : > { %p1909_p5 = scmp.lt.u32.totalorder %s1907_s17, %s1903_s5  ;;  %p1911_p13 = scmp.lt.u32.totalorder %s1903_s5, %s2751_s7 }
 0x2b6   : > { %p1905_p2 = pnand %p1904_p0, %p2813_p12 }
 0x2b7   : > { %p1910_p3 = por %p1909_p5, %p1908_p6 }
 0x2b8   : > { %p1906_p7 = pneg %p1905_p2 }
 0x2b9   : > { %p1912_p8 = por %p1911_p13, %p1910_p3 }
 0x2bb   : > { %p1913_p9 = pnand %p1912_p8, %p1906_p7 }
 0x2bd   : > { %1916 = shalt.err (!%p1913_p9)
}
 0x2be   : > { %s1974_s4 = smov 128   ;;  %s1975_s6 = smov 8  }
 0x2bf   : > { %1773 = dma.vmem_to_hbm [thread:$0]  (%p2813_p12), %s2753_s20, 256, %s2751_s7, %s1548_s16, %s1974_s4, %s1974_s4, %s1975_s6  }
 0x2c0 PF: > { %s1576_s19 = sand.u32 1, %s1947_s9   ;;  %p2814_p10 = scmp.ne.s32.totalorder %s2806_s22, 0 }
 0x2c1   : > { %p2815_p1 = scmp.ge.s32.totalorder %s1959_s12, 2  ;;  %s1577_s25 = scalar_lea.sflag [#allocation5], %s1576_s19 }
 0x2c3   : > { %p1784_p4 = pnand %p2815_p1, %p2814_p10 }
 0x2c5   : > { %1942 = dma.done.wait (!%p1784_p4), %s1577_s25, 256  }
 0x2c6   : > { %1944 = vsyncadd (!%p1784_p4), %s1577_s25, 4294967040  ;;  %p16_p11 = scmp.ge.s32.totalorder %s2016_s15, 4   ;;  %s2816_s9 = smov %s1951_s10 }
 0x2c7   : > { %s2817_s10 = smov %s1955_s11  ;;  %s2818_s11 = smov %s2028_s18 }
 0x2c8   : > { %s2819_s12 = smov %s2016_s15  ;;  %18 = sbr.rel (!%p16_p11) target bundleno = 6 (0x6), region = 82 }
 0x2cf   :  { %1582 = vsyncpa [#allocation4], 1 }
 0x2d0   :  { %1584 = vsyncpa [#allocation4 + $0x1], 1 }
 0x2d1   :  { %1585 = vsyncpa [#allocation5], 1 }
 0x2d2   :  { %1587 = vsyncpa [#allocation5 + $0x1], 1 }
 0x2d3   :  { %1588 = vsyncpa [#allocation6], 1 }
 0x2d4   :  { %1590 = vsyncpa [#allocation6 + $0x1], 1 }

</bundles_post_ra>
